<compile_context>
chip_gen: v7x
topology: tpu7x:2x2x1
jax: 0.10.0
libtpu: 0.0.40
codegen_flags: <defaults>
</compile_context>

<pallas_src>
import numpy as np
import jax
import jax.numpy as jnp
from jax.experimental import pallas as pl
from jax.experimental.pallas import tpu as pltpu

BN_EPS = 1e-5
LANE_MULT = 256            # MXU width on v6e/v7x; two clean passes on v5e's 128-wide MXU


def _round_up(x, m):
    return (x + m - 1) // m * m


# --------------------------------------------------------------------------------
# Kernel 1: conv-as-matmul (K-tiled) + per-tile partial BN statistics.
# grid = (row_tile [parallel], k_tile [arbitrary, innermost])
# --------------------------------------------------------------------------------
def _conv_stats_kernel(cols_ref, w_ref, y_ref, part_ref, acc_ref):
    k = pl.program_id(1)
    nk = pl.num_programs(1)

    @pl.when(k == 0)
    def _init():
        acc_ref[...] = jnp.zeros_like(acc_ref)

    acc_ref[...] += jnp.dot(cols_ref[...], w_ref[...],
                            preferred_element_type=jnp.float32)

    @pl.when(k == nk - 1)
    def _finalize():
        acc = acc_ref[...]
        y_ref[...] = acc                                        # pre-BN spill (f32)
        s = jnp.sum(acc, axis=0, keepdims=True)                 # (1, CG)
        sq = jnp.sum(acc * acc, axis=0, keepdims=True)          # (1, CG)
        # Pack [sum; sumsq; zeros] into this tile's (8, CG) partial-stats block.
        rows = jax.lax.broadcasted_iota(jnp.int32, part_ref.shape, 0)
        part_ref[...] = jnp.where(rows == 0, s, jnp.where(rows == 1, sq, 0.0))


# --------------------------------------------------------------------------------
# Kernel 2: BN scale/shift + ReLU applied in place (output aliases the pre-BN spill).
# grid = (row_tile [parallel],)
# --------------------------------------------------------------------------------
def _bn_relu_kernel(y_ref, scale_ref, shift_ref, out_ref):
    y = y_ref[...] * scale_ref[...] + shift_ref[...]
    out_ref[...] = jnp.maximum(y, 0.0).astype(out_ref.dtype)


def up_conv_forward(x_nchw, conv_w, conv_b, bn_gamma, bn_beta, *,
                    matmul_dtype=jnp.bfloat16,
                    tile_p_max=4096,
                    k_tile_max=512,
                    vmem_budget_bytes=40 * 1024 * 1024):
    """Forward pass matching PyTorch up_conv(ch_in, ch_out).forward(x).

    x_nchw : (N, Cin, H, W) float32
    conv_w : (Cout, Cin, 3, 3); conv_b : (Cout,) (unused: cancelled by training BN)
    bn_gamma, bn_beta : (Cout,)
    returns (N, Cout, 2H, 2W) float32
    """
    del conv_b  # conv bias followed by training-mode BatchNorm is mathematically a no-op
    N, Cin, H, W = x_nchw.shape
    Cout = conv_w.shape[0]
    Ho, Wo = 2 * H, 2 * W
    K = 9 * Cin
    P0 = N * H * W
    CG = _round_up(4 * Cout, LANE_MULT)        # lane-dense padded output width
    op_sz = jnp.dtype(matmul_dtype).itemsize

    # ---- contraction (K) tiling ----------------------------------------------------
    if K > k_tile_max:
        tk = k_tile_max                         # multiple of 128: lane-aligned cols blocks
        K_pad = _round_up(K, tk)
    else:
        tk = K                                  # full-dim block (no 128 constraint)
        K_pad = K
    n_k = K_pad // tk

    # ---- glue (layout only): narrow dtype FIRST, then 3x3 im2col at ORIGINAL res ---
    x = jnp.transpose(x_nchw, (0, 2, 3, 1)).astype(matmul_dtype)   # NHWC, bf16 by default
    xp = jnp.pad(x, ((0, 0), (1, 1), (1, 1), (0, 0)))              # (N, H+2, W+2, Cin)
    patches = [xp[:, dy:dy + H, dx:dx + W, :]
               for dy in range(3) for dx in range(3)]              # order (dy, dx, ci)
    cols = jnp.concatenate(patches, axis=-1).reshape(P0, K)        # (P0, 9*Cin)
    if K_pad != K:
        cols = jnp.pad(cols, ((0, 0), (0, K_pad - K)))             # zero K-pad: no-op in dot

    # ---- sub-pixel folded weights (f32 folding, narrow-cast at the end) -------------
    # Output parity py collapses kernel rows onto input-row offsets {-1,0,+1}:
    #   py=0: [w0, w1+w2, 0]   py=1: [0, w0+w1, w2]   (same for px / columns)
    wt = jnp.transpose(conv_w, (2, 3, 1, 0)).astype(jnp.float32)   # (ky, kx, ci, co)
    m = jnp.array([[[1., 0., 0.], [0., 1., 1.], [0., 0., 0.]],
                   [[0., 0., 0.], [1., 1., 0.], [0., 0., 1.]]], dtype=jnp.float32)
    w_eff = jnp.einsum('pak,qbl,klcd->abcpqd', m, m, wt)           # (dy,dx,ci,py,px,co)
    w_big = w_eff.reshape(K, 4 * Cout)                             # rows (dy,dx,ci), cols (py,px,co)
    w_big = jnp.pad(w_big, ((0, K_pad - K), (0, CG - 4 * Cout))).astype(matmul_dtype)

    # ---- row tiling from a VMEM budget (covers both calls; fits v7x 64 MiB) ---------
    per_row_conv = 2 * tk * op_sz + 2 * CG * 4 + CG * 4   # cols bufs + y bufs + acc scratch
    per_row_bn = 4 * CG * 4                               # y-in + out bufs (f32, call 2)
    per_row = max(per_row_conv, per_row_bn)
    fixed = 2 * tk * CG * op_sz + 2 * 8 * CG * 4 + (1 << 20)
    tp = max((vmem_budget_bytes - fixed) // per_row, 256)
    tp = min(tp, tile_p_max)
    P0_16 = _round_up(P0, 16)                             # 16: bf16 sublane packing
    if tp >= P0_16:
        tile_p = P0_16
    else:
        tile_p = max(16, (tp // 16) * 16)
    p0p = _round_up(P0, tile_p)
    n_tiles = p0p // tile_p
    if p0p != P0:
        cols = jnp.pad(cols, ((0, p0p - P0), (0, 0)))     # zero rows: stats-neutral

    # ---- call 1: conv matmul + per-tile partial stats --------------------------------
    flops1 = 2 * p0p * K_pad * CG
    bytes1 = (p0p * K_pad * op_sz + K_pad * CG * op_sz
              + p0p * CG * 4 + n_tiles * 8 * CG * 4)
    y_pre, part = pl.pallas_call(
        _conv_stats_kernel,
        out_shape=(jax.ShapeDtypeStruct((p0p, CG), jnp.float32),
                   jax.ShapeDtypeStruct((n_tiles * 8, CG), jnp.float32)),
        grid_spec=pltpu.PrefetchScalarGridSpec(
            num_scalar_prefetch=0,
            grid=(n_tiles, n_k),
            in_specs=[
                pl.BlockSpec((tile_p, tk), lambda t, k: (t, k)),   # cols tile
                pl.BlockSpec((tk, CG), lambda t, k: (k, 0)),       # folded-weight K-slab
            ],
            out_specs=[
                pl.BlockSpec((tile_p, CG), lambda t, k: (t, 0)),   # pre-BN activations
                pl.BlockSpec((8, CG), lambda t, k: (t, 0)),        # per-tile partial stats
            ],
            scratch_shapes=[pltpu.VMEM((tile_p, CG), jnp.float32)],
        ),
        compiler_params=pltpu.CompilerParams(
            dimension_semantics=("parallel", "arbitrary"),
            vmem_limit_bytes=64 * 1024 * 1024,
        ),
        cost_estimate=pl.CostEstimate(flops=flops1, transcendentals=0,
                                      bytes_accessed=bytes1),
    )(cols, w_big)

    # ---- tiny glue: combine partial stats, parity groups, finalize BN scale/shift ----
    part = part.reshape(n_tiles, 8, CG)
    col_sum = jnp.sum(part[:, 0, :], axis=0)                       # (CG,)
    col_sq = jnp.sum(part[:, 1, :], axis=0)                        # (CG,)
    g_sum = col_sum[:4 * Cout].reshape(4, Cout).sum(axis=0)        # per output channel
    g_sq = col_sq[:4 * Cout].reshape(4, Cout).sum(axis=0)
    count = float(N * Ho * Wo)
    mean = g_sum / count
    var = jnp.maximum(g_sq / count - mean * mean, 0.0)             # biased, as PyTorch BN
    scale_c = bn_gamma.astype(jnp.float32) * jax.lax.rsqrt(var + BN_EPS)
    shift_c = bn_beta.astype(jnp.float32) - mean * scale_c
    scale = jnp.pad(jnp.tile(scale_c, 4), (0, CG - 4 * Cout)).reshape(1, CG)
    shift = jnp.pad(jnp.tile(shift_c, 4), (0, CG - 4 * Cout)).reshape(1, CG)

    # ---- call 2: BN scale/shift + ReLU, in place over the pre-BN spill ---------------
    flops2 = 2 * p0p * CG
    bytes2 = 2 * p0p * CG * 4 + 2 * CG * 4
    out2d = pl.pallas_call(
        _bn_relu_kernel,
        out_shape=jax.ShapeDtypeStruct((p0p, CG), jnp.float32),
        grid_spec=pltpu.PrefetchScalarGridSpec(
            num_scalar_prefetch=0,
            grid=(n_tiles,),
            in_specs=[
                pl.BlockSpec((tile_p, CG), lambda t: (t, 0)),      # pre-BN activations
                pl.BlockSpec((1, CG), lambda t: (0, 0)),           # BN scale
                pl.BlockSpec((1, CG), lambda t: (0, 0)),           # BN shift
            ],
            out_specs=pl.BlockSpec((tile_p, CG), lambda t: (t, 0)),
        ),
        compiler_params=pltpu.CompilerParams(
            dimension_semantics=("parallel",),
            vmem_limit_bytes=64 * 1024 * 1024,
        ),
        cost_estimate=pl.CostEstimate(flops=flops2, transcendentals=0,
                                      bytes_accessed=bytes2),
        input_output_aliases={0: 0},
    )(y_pre, scale, shift)

    # ---- glue: depth-to-space back to NCHW --------------------------------------------
    out = out2d[:P0, :4 * Cout].reshape(N, H, W, 2, 2, Cout)       # (n, i, j, py, px, co)
    out = jnp.transpose(out, (0, 5, 1, 3, 2, 4)).reshape(N, Cout, Ho, Wo)
    return out


def _reference(x_nchw, conv_w, conv_b, bn_gamma, bn_beta):
    """Pure-JAX reference mirroring the PyTorch module (training-mode BN)."""
    x = jnp.repeat(jnp.repeat(x_nchw, 2, axis=2), 2, axis=3)
    y = jax.lax.conv_general_dilated(
        x, conv_w, window_strides=(1, 1), padding=((1, 1), (1, 1)),
        dimension_numbers=("NCHW", "OIHW", "NCHW"),
        precision=jax.lax.Precision.HIGHEST,
    ) + conv_b[None, :, None, None]
    mean = jnp.mean(y, axis=(0, 2, 3), keepdims=True)
    var = jnp.mean((y - mean) ** 2, axis=(0, 2, 3), keepdims=True)
    yhat = (y - mean) * jax.lax.rsqrt(var + BN_EPS)
    y = bn_gamma[None, :, None, None] * yhat + bn_beta[None, :, None, None]
    return jnp.maximum(y, 0.0)


if __name__ == "__main__":
    root = jax.random.PRNGKey(0)

    def make_inputs(key, n, cin, cout, h, w):
        kx, kw, kb = jax.random.split(key, 3)
        x = jax.random.normal(kx, (n, cin, h, w), dtype=jnp.float32)
        conv_w = 0.1 * jax.random.normal(kw, (cout, cin, 3, 3), dtype=jnp.float32)
        conv_b = 0.05 * jax.random.normal(kb, (cout,), dtype=jnp.float32)
        bn_gamma = jnp.ones((cout,), jnp.float32)     # nn.BatchNorm2d defaults
        bn_beta = jnp.zeros((cout,), jnp.float32)
        return x, conv_w, conv_b, bn_gamma, bn_beta

    fwd = jax.jit(up_conv_forward,
                  static_argnames=("matmul_dtype", "tile_p_max",
                                   "k_tile_max", "vmem_budget_bytes"))

    # main config: batch=2, ch_in=4, ch_out=8, spatial 16 -> 32
    N, Cin, Cout, H, W = 2, 4, 8, 16, 16
    args = make_inputs(root, N, Cin, Cout, H, W)
    ref = _reference(*args)

    # 1) default fast path: bf16 MXU operands, budget-derived single row tile.
    out_bf16 = jax.block_until_ready(fwd(*args))
    assert out_bf16.shape == (N, Cout, 2 * H, 2 * W), out_bf16.shape
    assert jnp.allclose(out_bf16, ref, rtol=3e-2, atol=5e-2), (
        float(jnp.max(jnp.abs(out_bf16 - ref))))

    # 2) f32 operands, small row tile -> exercises the multi-tile partial-stats path.
    out_f32 = jax.block_until_ready(
        fwd(*args, matmul_dtype=jnp.float32, tile_p_max=128))
    assert jnp.allclose(out_f32, ref, rtol=1e-3, atol=1e-3), (
        float(jnp.max(jnp.abs(out_f32 - ref))))

    # 3) larger Cin with a forced small K tile -> exercises the K-accumulation loop.
    N2, Cin2, Cout2, H2, W2 = 1, 32, 8, 8, 8
    args2 = make_inputs(jax.random.fold_in(root, 1), N2, Cin2, Cout2, H2, W2)
    ref2 = _reference(*args2)
    out2 = jax.block_until_ready(fwd(*args2, k_tile_max=128))
    assert out2.shape == (N2, Cout2, 2 * H2, 2 * W2), out2.shape
    assert jnp.allclose(out2, ref2, rtol=3e-2, atol=6e-2), (
        float(jnp.max(jnp.abs(out2 - ref2))))

    print("KERNEL_OK")
</pallas_src>

<mosaic_0001>
module attributes {stable_mosaic.version = 11 : i64} {
  func.func @_conv_stats_kernel(%arg0: i32, %arg1: i32, %arg2: memref<512x36xbf16, #tpu.memory_space<vmem>>, %arg3: memref<36x256xbf16, #tpu.memory_space<vmem>>, %arg4: memref<512x256xf32, #tpu.memory_space<vmem>>, %arg5: memref<8x256xf32, #tpu.memory_space<vmem>>, %arg6: memref<512x256xf32, #tpu.memory_space<vmem>>) attributes {dimension_semantics = [#tpu.dimension_semantics<parallel>, #tpu.dimension_semantics<arbitrary>], iteration_bounds = array<i64: 1, 1>, scalar_prefetch = 0 : i64, scratch_operands = 1 : i64, tpu.core_type = #tpu.core_type<tc>, window_params = [{transform_indices = @transform_0, window_bounds = array<i64: 512, 36>}, {transform_indices = @transform_1, window_bounds = array<i64: 36, 256>}, {transform_indices = @transform_2, window_bounds = array<i64: 512, 256>}, {transform_indices = @transform_3, window_bounds = array<i64: 8, 256>}]} {
    %c0_i32 = arith.constant 0 : i32
    %0 = arith.cmpi eq, %arg1, %c0_i32 : i32
    %1 = arith.extui %0 : i1 to i32
    %c0_i32_0 = arith.constant 0 : i32
    %2 = arith.cmpi ne, %1, %c0_i32_0 : i32
    scf.if %2 {
      %cst_10 = arith.constant 0.000000e+00 : f32
      %12 = vector.broadcast %cst_10 : f32 to vector<512x256xf32>
      %c0_11 = arith.constant 0 : index
      %c0_12 = arith.constant 0 : index
      %13 = vector.load %arg6[%c0_11, %c0_12] : memref<512x256xf32, #tpu.memory_space<vmem>>, vector<512x256xf32>
      tpu.vector_store %arg6[%c0_11, %c0_12], %12 {strides = array<i32>} : memref<512x256xf32, #tpu.memory_space<vmem>>, vector<512x256xf32>,
    } else {
    }
    %c0 = arith.constant 0 : index
    %c0_1 = arith.constant 0 : index
    %3 = vector.load %arg6[%c0, %c0_1] : memref<512x256xf32, #tpu.memory_space<vmem>>, vector<512x256xf32>
    %c0_2 = arith.constant 0 : index
    %c0_3 = arith.constant 0 : index
    %4 = vector.load %arg2[%c0_2, %c0_3] : memref<512x36xbf16, #tpu.memory_space<vmem>>, vector<512x36xbf16>
    %c0_4 = arith.constant 0 : index
    %c0_5 = arith.constant 0 : index
    %5 = vector.load %arg3[%c0_4, %c0_5] : memref<36x256xbf16, #tpu.memory_space<vmem>>, vector<36x256xbf16>
    %cst = arith.constant dense<0.000000e+00> : vector<512x256xf32>
    %6 = tpu.matmul %4, %5, %cst {dimension_numbers = #tpu.dot_dimension_numbers<[1], [0], [0], [1], [0, 0, 1, 1], [], []>} : vector<512x36xbf16>, vector<36x256xbf16>, vector<512x256xf32> -> vector<512x256xf32>
    %7 = arith.addf %3, %6 : vector<512x256xf32>
    %c0_6 = arith.constant 0 : index
    %c0_7 = arith.constant 0 : index
    %8 = vector.load %arg6[%c0_6, %c0_7] : memref<512x256xf32, #tpu.memory_space<vmem>>, vector<512x256xf32>
    tpu.vector_store %arg6[%c0_6, %c0_7], %7 {strides = array<i32>} : memref<512x256xf32, #tpu.memory_space<vmem>>, vector<512x256xf32>,
    %c0_i32_8 = arith.constant 0 : i32
    %9 = arith.cmpi eq, %arg1, %c0_i32_8 : i32
    %10 = arith.extui %9 : i1 to i32
    %c0_i32_9 = arith.constant 0 : i32
    %11 = arith.cmpi ne, %10, %c0_i32_9 : i32
    scf.if %11 {
      %c0_10 = arith.constant 0 : index
      %c0_11 = arith.constant 0 : index
      %12 = vector.load %arg6[%c0_10, %c0_11] : memref<512x256xf32, #tpu.memory_space<vmem>>, vector<512x256xf32>
      %c0_12 = arith.constant 0 : index
      %c0_13 = arith.constant 0 : index
      %13 = vector.load %arg4[%c0_12, %c0_13] : memref<512x256xf32, #tpu.memory_space<vmem>>, vector<512x256xf32>
      tpu.vector_store %arg4[%c0_12, %c0_13], %12 {strides = array<i32>} : memref<512x256xf32, #tpu.memory_space<vmem>>, vector<512x256xf32>,
      %cst_14 = arith.constant dense<0.000000e+00> : vector<256xf32>
      %14 = vector.multi_reduction <add>, %12, %cst_14 [0] : vector<512x256xf32> to vector<256xf32>
      %15 = vector.shape_cast %14 : vector<256xf32> to vector<1x256xf32>
      %16 = arith.mulf %12, %12 : vector<512x256xf32>
      %cst_15 = arith.constant dense<0.000000e+00> : vector<256xf32>
      %17 = vector.multi_reduction <add>, %16, %cst_15 [0] : vector<512x256xf32> to vector<256xf32>
      %18 = vector.shape_cast %17 : vector<256xf32> to vector<1x256xf32>
      %19 = tpu.iota {dimensions = array<i32: 0>} : vector<8x256xi32>
      %c0_i32_16 = arith.constant 0 : i32
      %20 = vector.broadcast %c0_i32_16 : i32 to vector<8x256xi32>
      %21 = arith.cmpi eq, %19, %20 : vector<8x256xi32>
      %c1_i32 = arith.constant 1 : i32
      %22 = vector.broadcast %c1_i32 : i32 to vector<8x256xi32>
      %23 = arith.cmpi eq, %19, %22 : vector<8x256xi32>
      %cst_17 = arith.constant 0.000000e+00 : f32
      %24 = vector.shape_cast %18 : vector<1x256xf32> to vector<1x256xf32>
      %25 = vector.broadcast %24 : vector<1x256xf32> to vector<8x256xf32>
      %26 = vector.broadcast %cst_17 : f32 to vector<8x256xf32>
      %27 = arith.select %23, %25, %26 : vector<8x256xi1>, vector<8x256xf32>
      %28 = vector.shape_cast %15 : vector<1x256xf32> to vector<1x256xf32>
      %29 = vector.broadcast %28 : vector<1x256xf32> to vector<8x256xf32>
      %30 = arith.select %21, %29, %27 : vector<8x256xi1>, vector<8x256xf32>
      %c0_18 = arith.constant 0 : index
      %c0_19 = arith.constant 0 : index
      %31 = vector.load %arg5[%c0_18, %c0_19] : memref<8x256xf32, #tpu.memory_space<vmem>>, vector<8x256xf32>
      tpu.vector_store %arg5[%c0_18, %c0_19], %30 {strides = array<i32>} : memref<8x256xf32, #tpu.memory_space<vmem>>, vector<8x256xf32>,
    } else {
    }
    return
  }
  func.func @transform_0(%arg0: i32, %arg1: i32) -> (i32, i32) {
    %c0_i32 = arith.constant 0 : i32
    return %arg0, %arg1 : i32, i32
  }
  func.func @transform_1(%arg0: i32, %arg1: i32) -> (i32, i32) {
    %c0_i32 = arith.constant 0 : i32
    %c0_i32_0 = arith.constant 0 : i32
    return %arg1, %c0_i32 : i32, i32
  }
  func.func @transform_2(%arg0: i32, %arg1: i32) -> (i32, i32) {
    %c0_i32 = arith.constant 0 : i32
    %c0_i32_0 = arith.constant 0 : i32
    return %arg0, %c0_i32 : i32, i32
  }
  func.func @transform_3(%arg0: i32, %arg1: i32) -> (i32, i32) {
    %c0_i32 = arith.constant 0 : i32
    %c0_i32_0 = arith.constant 0 : i32
    return %arg0, %c0_i32 : i32, i32
  }
}

module attributes {stable_mosaic.version = 11 : i64} {
  func.func @_bn_relu_kernel(%arg0: i32, %arg1: memref<512x256xf32, #tpu.memory_space<vmem>>, %arg2: memref<1x256xf32, #tpu.memory_space<vmem>>, %arg3: memref<1x256xf32, #tpu.memory_space<vmem>>, %arg4: memref<512x256xf32, #tpu.memory_space<vmem>>) attributes {dimension_semantics = [#tpu.dimension_semantics<parallel>], iteration_bounds = array<i64: 1>, scalar_prefetch = 0 : i64, scratch_operands = 0 : i64, tpu.core_type = #tpu.core_type<tc>, window_params = [{transform_indices = @transform_0, window_bounds = array<i64: 512, 256>}, {pipeline_mode = #tpu.pipeline_mode<synchronous>, transform_indices = @transform_1, window_bounds = array<i64: 1, 256>}, {pipeline_mode = #tpu.pipeline_mode<synchronous>, transform_indices = @transform_2, window_bounds = array<i64: 1, 256>}, {transform_indices = @transform_3, window_bounds = array<i64: 512, 256>}]} {
    %c0 = arith.constant 0 : index
    %c0_0 = arith.constant 0 : index
    %0 = vector.load %arg1[%c0, %c0_0] : memref<512x256xf32, #tpu.memory_space<vmem>>, vector<512x256xf32>
    %c0_1 = arith.constant 0 : index
    %c0_2 = arith.constant 0 : index
    %1 = vector.load %arg2[%c0_1, %c0_2] : memref<1x256xf32, #tpu.memory_space<vmem>>, vector<1x256xf32>
    %2 = vector.broadcast %1 : vector<1x256xf32> to vector<512x256xf32>
    %3 = arith.mulf %0, %2 : vector<512x256xf32>
    %c0_3 = arith.constant 0 : index
    %c0_4 = arith.constant 0 : index
    %4 = vector.load %arg3[%c0_3, %c0_4] : memref<1x256xf32, #tpu.memory_space<vmem>>, vector<1x256xf32>
    %5 = vector.broadcast %4 : vector<1x256xf32> to vector<512x256xf32>
    %6 = arith.addf %3, %5 : vector<512x256xf32>
    %cst = arith.constant 0.000000e+00 : f32
    %7 = vector.broadcast %cst : f32 to vector<512x256xf32>
    %8 = arith.maximumf %6, %7 : vector<512x256xf32>
    %c0_5 = arith.constant 0 : index
    %c0_6 = arith.constant 0 : index
    %9 = vector.load %arg4[%c0_5, %c0_6] : memref<512x256xf32, #tpu.memory_space<vmem>>, vector<512x256xf32>
    tpu.vector_store %arg4[%c0_5, %c0_6], %8 {strides = array<i32>} : memref<512x256xf32, #tpu.memory_space<vmem>>, vector<512x256xf32>,
    return
  }
  func.func @transform_0(%arg0: i32) -> (i32, i32) {
    %c0_i32 = arith.constant 0 : i32
    %c0_i32_0 = arith.constant 0 : i32
    return %arg0, %c0_i32 : i32, i32
  }
  func.func @transform_1(%arg0: i32) -> (i32, i32) {
    %c0_i32 = arith.constant 0 : i32
    %c0_i32_0 = arith.constant 0 : i32
    %c0_i32_1 = arith.constant 0 : i32
    return %c0_i32, %c0_i32_0 : i32, i32
  }
  func.func @transform_2(%arg0: i32) -> (i32, i32) {
    %c0_i32 = arith.constant 0 : i32
    %c0_i32_0 = arith.constant 0 : i32
    %c0_i32_1 = arith.constant 0 : i32
    return %c0_i32, %c0_i32_0 : i32, i32
  }
  func.func @transform_3(%arg0: i32) -> (i32, i32) {
    %c0_i32 = arith.constant 0 : i32
    %c0_i32_0 = arith.constant 0 : i32
    return %arg0, %c0_i32 : i32, i32
  }
}

</mosaic_0001>

<bundles_post_ra>
// kernel: tile.18
= control target key start
LH: loop header
LB: loop body
LE: loop exit
PB: predicated region body
PF: predicated region fallthrough
CT: control target
= control target key end

     0   :  { %s22_s0 = inlined_call_operand.vmem [shape: f32[8], index: 0, kind: input, shape index: {}]   ;;  %s23_s1 = inlined_call_operand.vmem [shape: f32[4,8], index: 1, kind: output, shape index: {}]  }
   0x1   :  { %v4_v0 = vld [vmem:[%s22_s0] ss:$0 sm:$0xff] }
   0x2   :  { %5 = vst [vmem:[%s23_s1] sm:$0xf] %v4_v0 }

// kernel: tile.19
= control target key start
LH: loop header
LB: loop body
LE: loop exit
PB: predicated region body
PF: predicated region fallthrough
CT: control target
= control target key end

     0   :  { %vm7_vm0 = vcmask 64512   ;;  %s37_s8 = smov 8   ;;  %s38_s9 = smov 16   ;;  %vm13_vm1 = vcmask 261312   ;;  %vm19_vm2 = vcmask 195712   ;;  %vm25_vm3 = vcmask 130112   ;;  %s55_s0 = inlined_call_operand.vmem [shape: f32[4,8], index: 0, kind: input, shape index: {}]   ;;  %s56_s1 = inlined_call_operand.vmem [shape: f32[32], index: 1, kind: output, shape index: {}]  }
   0x1   :  { %v4_v0 = vld [vmem:[%s55_s0] sm:$0xf]  ;;  %s36_s0 = smov 24  }
   0x2   :  { %5 = vst [vmem:[#allocation1] sm:$0xf] %v4_v0 }
   0x9   :  { %v10_v1 = vld [vmem:[#allocation1 + $0x3] sm:$0x1]   ;;  %v22_v2 = vld [vmem:[#allocation1 + $0x1] sm:$0x1]   ;;  %v6_v3 = vld [vmem:[#allocation1] sm:$0x1]  }
   0xa   :  { %11 = vrot.lane.b32.xlu0 %v10_v1, %s36_s0  ;;  %23 = vrot.lane.b32.xlu1 %v22_v2, %s37_s8  ;;  %v16_v4 = vld [vmem:[#allocation1 + $0x2] sm:$0x1]   ;;  %8 = vst.msk [vmem:[#allocation0] sm:$0x1] %vm7_vm0, %v6_v3  }
   0xe   :  { %17 = vrot.lane.b32.xlu0 %v16_v4, %s38_s9 }
  0x7c   :  { %v12_v5 = vpop.permute.xlu0 %11   ;;  %v24_v6 = vpop.permute.xlu1 %23  }
  0x7d   :  { %14 = vst.msk [vmem:[#allocation0] sm:$0x1] %vm13_vm1, %v12_v5  }
  0x80   :  { %v18_v7 = vpop.permute.xlu0 %17  }
  0x81   :  { %20 = vst.msk [vmem:[#allocation0] sm:$0x1] %vm19_vm2, %v18_v7  }
  0x82   :  { %26 = vst.msk [vmem:[#allocation0] sm:$0x1] %vm25_vm3, %v24_v6  }
  0x89   :  { %v30_v8 = vld [vmem:[#allocation0] sm:$0x1] }
  0x8a   :  { %32 = vst [vmem:[%s56_s1] sm:$0x1] %v30_v8 }

// kernel: up_conv_forward.3
= control target key start
LH: loop header
LB: loop body
LE: loop exit
PB: predicated region body
PF: predicated region fallthrough
CT: control target
= control target key end

     0   :  { %8 = vsyncpa [#allocation3], 0  ;;  %s1185_s0 = inlined_call_operand.hbm [shape: f32[512,256], index: 0, kind: input, shape index: {}, may-alias: {0,3}]   ;;  %s1186_s1 = inlined_call_operand.hbm [shape: f32[1,256], index: 1, kind: input, shape index: {}]   ;;  %s1187_s2 = inlined_call_operand.hbm [shape: f32[1,256], index: 2, kind: input, shape index: {}]   ;;  %s1188_s3 = inlined_call_operand.hbm [shape: f32[512,256], index: 3, kind: output, shape index: {}, may-alias: {0,3}]  }
   0x1   :  { %9 = vsyncpa [#allocation6], 0 }
   0x2   :  { %10 = vsyncpa [#allocation4], 0  ;;  %s834_s12 = smov [#allocation5]   ;;  %s835_s14 = smov [#allocation2]  }
   0x3   :  { %s29_s13 = sshll.u32 %s834_s12, 4  ;;  %s16_s15 = sshll.u32 %s835_s14, 4  ;;  %s30_s13 = int_to_ptr.vmem [resolvable:$true] %s29_s13  ;;  %s860_s15 = int_to_ptr.vmem [resolvable:$true] %s16_s15 }
   0x4   :  { %s740_s18 = scalar_lea.hbm %s1186_s1, 32 }
   0x5   :  { %p741_p0 = scmp.ne.s32.totalorder %s1186_s1, %s740_s18  ;;  %p744_p1 = scmp.lt.u32.totalorder %s740_s18, %s1186_s1 }
   0x7   :  { %p746_p2 = pnand %p744_p1, %p741_p0 }
   0x9   :  { %749 = shalt.err (!%p746_p2)
}
   0xa   :  { %s750_s23 = scalar_lea.vmem %s30_s13, 32  ;;  %p755_p4 = scmp.lt.s32.totalorder %s30_s13, %s30_s13 }
   0xb   :  { %p751_p3 = scmp.ne.s32.totalorder %s30_s13, %s750_s23  ;;  %p756_p5 = scmp.lt.s32.totalorder %s750_s23, %s750_s23 }
   0xd   :  { %p757_p6 = por %p756_p5, %p755_p4 }
   0xf   :  { %p758_p7 = pnand %p757_p6, %p751_p3 }
  0x11   :  { %761 = shalt.err (!%p758_p7)
}
  0x12   :  { %32 = dma.hbm_to_vmem [thread:$0]  %s1186_s1, 32, %s30_s13, [#allocation6]  }
  0x13   :  { %s762_s28 = scalar_lea.hbm %s1185_s0, 16384 }
  0x14   :  { %p763_p8 = scmp.ne.s32.totalorder %s1185_s0, %s762_s28  ;;  %p766_p9 = scmp.lt.u32.totalorder %s762_s28, %s1185_s0 }
  0x16   :  { %p768_p10 = pnand %p766_p9, %p763_p8 }
  0x18   :  { %771 = shalt.err (!%p768_p10)
}
  0x19   :  { %s772_s6 = scalar_lea.vmem %s860_s15, 16384  ;;  %p777_p12 = scmp.lt.s32.totalorder %s860_s15, %s860_s15 }
  0x1a   :  { %p773_p11 = scmp.ne.s32.totalorder %s860_s15, %s772_s6  ;;  %p778_p13 = scmp.lt.s32.totalorder %s772_s6, %s772_s6 }
  0x1c   :  { %p779_p0 = por %p778_p13, %p777_p12 }
  0x1e   :  { %p780_p1 = pnand %p779_p0, %p773_p11 }
  0x20   :  { %783 = shalt.err (!%p780_p1)
}
  0x21   :  { %s836_s1 = smov 256   ;;  %s837_s7 = smov 16  }
  0x22   :  { %22 = dma.hbm_to_vmem [thread:$0]  %s1185_s0, 16384, %s860_s15, [#allocation3], %s836_s1, %s836_s1, %s837_s7  }
  0x23   :  { %s838_s10 = smov [#allocation7]   ;;  %s784_s14 = scalar_lea.hbm %s1187_s2, 32 }
  0x24   :  { %s39_s11 = sshll.u32 %s838_s10, 4  ;;  %p785_p2 = scmp.ne.s32.totalorder %s1187_s2, %s784_s14  ;;  %s40_s11 = int_to_ptr.vmem [resolvable:$true] %s39_s11 }
  0x25   :  { %p788_p3 = scmp.lt.u32.totalorder %s784_s14, %s1187_s2 }
  0x27   :  { %p790_p4 = pnand %p788_p3, %p785_p2 }
  0x29   :  { %793 = shalt.err (!%p790_p4)
}
  0x2a   :  { %s794_s20 = scalar_lea.vmem %s40_s11, 32  ;;  %p799_p6 = scmp.lt.s32.totalorder %s40_s11, %s40_s11 }
  0x2b   :  { %p795_p5 = scmp.ne.s32.totalorder %s40_s11, %s794_s20  ;;  %p800_p7 = scmp.lt.s32.totalorder %s794_s20, %s794_s20 }
  0x2d   :  { %p801_p8 = por %p800_p7, %p799_p6 }
  0x2f   :  { %p802_p9 = pnand %p801_p8, %p795_p5 }
  0x31   :  { %805 = shalt.err (!%p802_p9)
}
  0x32   :  { %42 = dma.hbm_to_vmem [thread:$0]  %s1187_s2, 32, %s40_s11, [#allocation6]  }
  0x33   :  { %828 = dma.done.wait [#allocation3], 16384  }
  0x34   :  { %829 = vsyncadd [#allocation3], 4294950912 }
  0x35   :  { %830 = dma.done.wait [#allocation6], 64  }
  0x36   :  { %831 = vsyncadd [#allocation6], 4294967232  ;;  %v182_v0 = vlaneseq  ;;  %v52_v4 = vld [vmem:[#allocation2] sm:$0xff]  ;;  %v53_v9 = vld [vmem:[#allocation2 + $0x8] sm:$0xff]  ;;  %s839_s2 = smov [#allocation8]  }
  0x37   :  { %v180_v5 = vld [vmem:[#allocation5] sm:$0x3]  ;;  %v320_v6 = vld [vmem:[#allocation7] sm:$0x3]  ;;  %v54_v12 = vld [vmem:[#allocation2 + $0x10] sm:$0xff]  ;;  %s721_s21 = sshll.u32 %s839_s2, 4  ;;  %s722_s21 = int_to_ptr.vmem [resolvable:$true] %s721_s21 }
  0x38   :  { %v183_v1 = vshrl.u32 %v182_v0, 7  ;;  %v55_v13 = vld [vmem:[#allocation2 + $0x18] sm:$0xff]  ;;  %v56_v14 = vld [vmem:[#allocation2 + $0x20] sm:$0xff]  ;;  %v57_v15 = vld [vmem:[#allocation2 + $0x28] sm:$0xff]  ;;  %s806_s22 = scalar_lea.vmem %s722_s21, 16384  ;;  %p811_p11 = scmp.lt.s32.totalorder %s722_s21, %s722_s21 }
  0x39   :  { %v58_v16 = vld [vmem:[#allocation2 + $0x30] sm:$0xff]  ;;  %v59_v21 = vld [vmem:[#allocation2 + $0x38] sm:$0xff]  ;;  %v60_v30 = vld [vmem:[#allocation2 + $0x40] sm:$0xff]  ;;  %p807_p10 = scmp.ne.s32.totalorder %s722_s21, %s806_s22  ;;  %p812_p12 = scmp.lt.s32.totalorder %s806_s22, %s806_s22 }
  0x3a   :  { %v184_v2 = vsub.s32 0, %v183_v1  ;;  %v188_v3 = vsub.s32 1, %v183_v1  ;;  %v61_v31 = vld [vmem:[#allocation2 + $0x48] sm:$0xff]  ;;  %v62_v32 = vld [vmem:[#allocation2 + $0x50] sm:$0xff]  ;;  %v63_v37 = vld [vmem:[#allocation2 + $0x58] sm:$0xff] }
  0x3b   :  { %v64_v38 = vld [vmem:[#allocation2 + $0x60] sm:$0xff]  ;;  %v65_v39 = vld [vmem:[#allocation2 + $0x68] sm:$0xff]  ;;  %v66_v44 = vld [vmem:[#allocation2 + $0x70] sm:$0xff]  ;;  %p813_p13 = por %p812_p12, %p811_p11 }
  0x3c   :  { %v906_v7 = vrot.slane %v180_v5, %v184_v2  ;;  %v908_v8 = vrot.slane %v320_v6, %v184_v2  ;;  %v910_v10 = vrot.slane %v180_v5, %v188_v3  ;;  %v912_v11 = vrot.slane %v320_v6, %v188_v3  ;;  %v67_v45 = vld [vmem:[#allocation2 + $0x78] sm:$0xff]  ;;  %v68_v62 = vld [vmem:[#allocation2 + $0x80] sm:$0xff]  ;;  %v69_v63 = vld [vmem:[#allocation2 + $0x88] sm:$0xff] }
  0x3d   :  { %v70_v0 = vld [vmem:[#allocation2 + $0x90] sm:$0xff]  ;;  %v71_v5 = vld [vmem:[#allocation2 + $0x98] sm:$0xff]  ;;  %v72_v6 = vld [vmem:[#allocation2 + $0xa0] sm:$0xff]  ;;  %p814_p0 = pnand %p813_p13, %p807_p10 }
  0x3e   :  { %v192_v17 = vmul.f32 %v906_v7, %v52_v4  ;;  %v193_v18 = vmul.f32 %v910_v10, %v53_v9  ;;  %v194_v19 = vmul.f32 %v906_v7, %v54_v12  ;;  %v195_v20 = vmul.f32 %v910_v10, %v55_v13  ;;  %v73_v9 = vld [vmem:[#allocation2 + $0xa8] sm:$0xff] }
  0x3f   :  { %v196_v22 = vmul.f32 %v906_v7, %v56_v14  ;;  %v197_v23 = vmul.f32 %v910_v10, %v57_v15  ;;  %v198_v24 = vmul.f32 %v906_v7, %v58_v16  ;;  %v199_v25 = vmul.f32 %v910_v10, %v59_v21  ;;  %v74_v16 = vld [vmem:[#allocation2 + $0xb0] sm:$0xff] }
  0x40   :  { %v332_v26 = vadd.f32 %v908_v8, %v192_v17  ;;  %v333_v27 = vadd.f32 %v912_v11, %v193_v18  ;;  %v334_v28 = vadd.f32 %v908_v8, %v194_v19  ;;  %v335_v29 = vadd.f32 %v912_v11, %v195_v20  ;;  %v75_v17 = vld [vmem:[#allocation2 + $0xb8] sm:$0xff] }
  0x41   :  { %v336_v33 = vadd.f32 %v908_v8, %v196_v22  ;;  %v337_v34 = vadd.f32 %v912_v11, %v197_v23  ;;  %v338_v35 = vadd.f32 %v908_v8, %v198_v24  ;;  %v339_v36 = vadd.f32 %v912_v11, %v199_v25 }
  0x42   :  { %v460_v40 = vmax.f32 %v332_v26, 0.0  ;;  %v461_v41 = vmax.f32 %v333_v27, 0.0  ;;  %v462_v42 = vmax.f32 %v334_v28, 0.0  ;;  %v463_v43 = vmax.f32 %v335_v29, 0.0 }
  0x43   :  { %v464_v46 = vmax.f32 %v336_v33, 0.0  ;;  %v465_v47 = vmax.f32 %v337_v34, 0.0  ;;  %v466_v48 = vmax.f32 %v338_v35, 0.0  ;;  %v467_v49 = vmax.f32 %v339_v36, 0.0  ;;  %v76_v34 = vld [vmem:[#allocation2 + $0xc0] sm:$0xff]  ;;  %v77_v35 = vld [vmem:[#allocation2 + $0xc8] sm:$0xff] }
  0x44   :  { %588 = vst [vmem:[#allocation8] sm:$0xff] %v460_v40  ;;  %589 = vst [vmem:[#allocation8 + $0x8] sm:$0xff] %v461_v41  ;;  %v200_v50 = vmul.f32 %v906_v7, %v60_v30  ;;  %v201_v51 = vmul.f32 %v910_v10, %v61_v31  ;;  %v202_v52 = vmul.f32 %v906_v7, %v62_v32  ;;  %v78_v36 = vld [vmem:[#allocation2 + $0xd0] sm:$0xff]  ;;  %v79_v41 = vld [vmem:[#allocation2 + $0xd8] sm:$0xff] }
  0x45   :  { %590 = vst [vmem:[#allocation8 + $0x10] sm:$0xff] %v462_v42  ;;  %591 = vst [vmem:[#allocation8 + $0x18] sm:$0xff] %v463_v43  ;;  %v203_v53 = vmul.f32 %v910_v10, %v63_v37  ;;  %v204_v54 = vmul.f32 %v906_v7, %v64_v38  ;;  %v205_v55 = vmul.f32 %v910_v10, %v65_v39  ;;  %v80_v42 = vld [vmem:[#allocation2 + $0xe0] sm:$0xff]  ;;  %v81_v43 = vld [vmem:[#allocation2 + $0xe8] sm:$0xff] }
  0x46   :  { %592 = vst [vmem:[#allocation8 + $0x20] sm:$0xff] %v464_v46  ;;  %593 = vst [vmem:[#allocation8 + $0x28] sm:$0xff] %v465_v47  ;;  %v206_v56 = vmul.f32 %v906_v7, %v66_v44  ;;  %v207_v57 = vmul.f32 %v910_v10, %v67_v45  ;;  %v340_v58 = vadd.f32 %v908_v8, %v200_v50 }
  0x47   :  { %594 = vst [vmem:[#allocation8 + $0x30] sm:$0xff] %v466_v48  ;;  %595 = vst [vmem:[#allocation8 + $0x38] sm:$0xff] %v467_v49  ;;  %v341_v59 = vadd.f32 %v912_v11, %v201_v51  ;;  %v342_v60 = vadd.f32 %v908_v8, %v202_v52  ;;  %v343_v61 = vadd.f32 %v912_v11, %v203_v53  ;;  %v82_v48 = vld [vmem:[#allocation2 + $0xf0] sm:$0xff]  ;;  %v83_v49 = vld [vmem:[#allocation2 + $0xf8] sm:$0xff] }
  0x48   :  { %v344_v1 = vadd.f32 %v908_v8, %v204_v54  ;;  %v345_v2 = vadd.f32 %v912_v11, %v205_v55  ;;  %v346_v3 = vadd.f32 %v908_v8, %v206_v56  ;;  %v347_v4 = vadd.f32 %v912_v11, %v207_v57 }
  0x49   :  { %v468_v12 = vmax.f32 %v340_v58, 0.0  ;;  %v469_v13 = vmax.f32 %v341_v59, 0.0  ;;  %v470_v14 = vmax.f32 %v342_v60, 0.0  ;;  %v471_v15 = vmax.f32 %v343_v61, 0.0 }
  0x4a   :  { %v472_v18 = vmax.f32 %v344_v1, 0.0  ;;  %v473_v19 = vmax.f32 %v345_v2, 0.0  ;;  %v474_v20 = vmax.f32 %v346_v3, 0.0  ;;  %v475_v21 = vmax.f32 %v347_v4, 0.0  ;;  %v84_v2 = vld [vmem:[#allocation2 + $0x100] sm:$0xff]  ;;  %v85_v3 = vld [vmem:[#allocation2 + $0x108] sm:$0xff] }
  0x4b   :  { %596 = vst [vmem:[#allocation8 + $0x40] sm:$0xff] %v468_v12  ;;  %597 = vst [vmem:[#allocation8 + $0x48] sm:$0xff] %v469_v13  ;;  %v208_v22 = vmul.f32 %v906_v7, %v68_v62  ;;  %v209_v23 = vmul.f32 %v910_v10, %v69_v63  ;;  %v210_v24 = vmul.f32 %v906_v7, %v70_v0  ;;  %v86_v4 = vld [vmem:[#allocation2 + $0x110] sm:$0xff]  ;;  %v87_v13 = vld [vmem:[#allocation2 + $0x118] sm:$0xff] }
  0x4c   :  { %598 = vst [vmem:[#allocation8 + $0x50] sm:$0xff] %v470_v14  ;;  %599 = vst [vmem:[#allocation8 + $0x58] sm:$0xff] %v471_v15  ;;  %v211_v25 = vmul.f32 %v910_v10, %v71_v5  ;;  %v212_v26 = vmul.f32 %v906_v7, %v72_v6  ;;  %v213_v27 = vmul.f32 %v910_v10, %v73_v9  ;;  %v88_v14 = vld [vmem:[#allocation2 + $0x120] sm:$0xff]  ;;  %v89_v15 = vld [vmem:[#allocation2 + $0x128] sm:$0xff] }
  0x4d   :  { %600 = vst [vmem:[#allocation8 + $0x60] sm:$0xff] %v472_v18  ;;  %601 = vst [vmem:[#allocation8 + $0x68] sm:$0xff] %v473_v19  ;;  %v214_v28 = vmul.f32 %v906_v7, %v74_v16  ;;  %v215_v29 = vmul.f32 %v910_v10, %v75_v17  ;;  %v348_v30 = vadd.f32 %v908_v8, %v208_v22 }
  0x4e   :  { %602 = vst [vmem:[#allocation8 + $0x70] sm:$0xff] %v474_v20  ;;  %603 = vst [vmem:[#allocation8 + $0x78] sm:$0xff] %v475_v21  ;;  %v349_v31 = vadd.f32 %v912_v11, %v209_v23  ;;  %v350_v32 = vadd.f32 %v908_v8, %v210_v24  ;;  %v351_v33 = vadd.f32 %v912_v11, %v211_v25  ;;  %v90_v20 = vld [vmem:[#allocation2 + $0x130] sm:$0xff]  ;;  %v91_v21 = vld [vmem:[#allocation2 + $0x138] sm:$0xff] }
  0x4f   :  { %v352_v37 = vadd.f32 %v908_v8, %v212_v26  ;;  %v353_v38 = vadd.f32 %v912_v11, %v213_v27  ;;  %v354_v39 = vadd.f32 %v908_v8, %v214_v28  ;;  %v355_v40 = vadd.f32 %v912_v11, %v215_v29 }
  0x50   :  { %v476_v44 = vmax.f32 %v348_v30, 0.0  ;;  %v477_v45 = vmax.f32 %v349_v31, 0.0  ;;  %v478_v46 = vmax.f32 %v350_v32, 0.0  ;;  %v479_v47 = vmax.f32 %v351_v33, 0.0 }
  0x51   :  { %v480_v50 = vmax.f32 %v352_v37, 0.0  ;;  %v481_v51 = vmax.f32 %v353_v38, 0.0  ;;  %v482_v52 = vmax.f32 %v354_v39, 0.0  ;;  %v483_v53 = vmax.f32 %v355_v40, 0.0  ;;  %v92_v38 = vld [vmem:[#allocation2 + $0x140] sm:$0xff]  ;;  %v93_v39 = vld [vmem:[#allocation2 + $0x148] sm:$0xff] }
  0x52   :  { %604 = vst [vmem:[#allocation8 + $0x80] sm:$0xff] %v476_v44  ;;  %605 = vst [vmem:[#allocation8 + $0x88] sm:$0xff] %v477_v45  ;;  %v216_v54 = vmul.f32 %v906_v7, %v76_v34  ;;  %v217_v55 = vmul.f32 %v910_v10, %v77_v35  ;;  %v218_v56 = vmul.f32 %v906_v7, %v78_v36  ;;  %v94_v40 = vld [vmem:[#allocation2 + $0x150] sm:$0xff]  ;;  %v95_v45 = vld [vmem:[#allocation2 + $0x158] sm:$0xff] }
  0x53   :  { %606 = vst [vmem:[#allocation8 + $0x90] sm:$0xff] %v478_v46  ;;  %607 = vst [vmem:[#allocation8 + $0x98] sm:$0xff] %v479_v47  ;;  %v219_v57 = vmul.f32 %v910_v10, %v79_v41  ;;  %v220_v58 = vmul.f32 %v906_v7, %v80_v42  ;;  %v221_v59 = vmul.f32 %v910_v10, %v81_v43  ;;  %v96_v46 = vld [vmem:[#allocation2 + $0x160] sm:$0xff]  ;;  %v97_v47 = vld [vmem:[#allocation2 + $0x168] sm:$0xff] }
  0x54   :  { %608 = vst [vmem:[#allocation8 + $0xa0] sm:$0xff] %v480_v50  ;;  %609 = vst [vmem:[#allocation8 + $0xa8] sm:$0xff] %v481_v51  ;;  %v222_v60 = vmul.f32 %v906_v7, %v82_v48  ;;  %v223_v61 = vmul.f32 %v910_v10, %v83_v49  ;;  %v356_v62 = vadd.f32 %v908_v8, %v216_v54 }
  0x55   :  { %610 = vst [vmem:[#allocation8 + $0xb0] sm:$0xff] %v482_v52  ;;  %611 = vst [vmem:[#allocation8 + $0xb8] sm:$0xff] %v483_v53  ;;  %v357_v63 = vadd.f32 %v912_v11, %v217_v55  ;;  %v358_v0 = vadd.f32 %v908_v8, %v218_v56  ;;  %v359_v1 = vadd.f32 %v912_v11, %v219_v57  ;;  %v98_v52 = vld [vmem:[#allocation2 + $0x170] sm:$0xff]  ;;  %v99_v53 = vld [vmem:[#allocation2 + $0x178] sm:$0xff] }
  0x56   :  { %v360_v5 = vadd.f32 %v908_v8, %v220_v58  ;;  %v361_v6 = vadd.f32 %v912_v11, %v221_v59  ;;  %v362_v9 = vadd.f32 %v908_v8, %v222_v60  ;;  %v363_v12 = vadd.f32 %v912_v11, %v223_v61 }
  0x57   :  { %v484_v16 = vmax.f32 %v356_v62, 0.0  ;;  %v485_v17 = vmax.f32 %v357_v63, 0.0  ;;  %v486_v18 = vmax.f32 %v358_v0, 0.0  ;;  %v487_v19 = vmax.f32 %v359_v1, 0.0 }
  0x58   :  { %v488_v22 = vmax.f32 %v360_v5, 0.0  ;;  %v489_v23 = vmax.f32 %v361_v6, 0.0  ;;  %v490_v24 = vmax.f32 %v362_v9, 0.0  ;;  %v491_v25 = vmax.f32 %v363_v12, 0.0  ;;  %v100_v6 = vld [vmem:[#allocation2 + $0x180] sm:$0xff]  ;;  %v101_v9 = vld [vmem:[#allocation2 + $0x188] sm:$0xff] }
  0x59   :  { %612 = vst [vmem:[#allocation8 + $0xc0] sm:$0xff] %v484_v16  ;;  %613 = vst [vmem:[#allocation8 + $0xc8] sm:$0xff] %v485_v17  ;;  %v224_v26 = vmul.f32 %v906_v7, %v84_v2  ;;  %v225_v27 = vmul.f32 %v910_v10, %v85_v3  ;;  %v226_v28 = vmul.f32 %v906_v7, %v86_v4  ;;  %v102_v12 = vld [vmem:[#allocation2 + $0x190] sm:$0xff]  ;;  %v103_v17 = vld [vmem:[#allocation2 + $0x198] sm:$0xff] }
  0x5a   :  { %614 = vst [vmem:[#allocation8 + $0xd0] sm:$0xff] %v486_v18  ;;  %615 = vst [vmem:[#allocation8 + $0xd8] sm:$0xff] %v487_v19  ;;  %v227_v29 = vmul.f32 %v910_v10, %v87_v13  ;;  %v228_v30 = vmul.f32 %v906_v7, %v88_v14  ;;  %v229_v31 = vmul.f32 %v910_v10, %v89_v15  ;;  %v104_v18 = vld [vmem:[#allocation2 + $0x1a0] sm:$0xff]  ;;  %v105_v19 = vld [vmem:[#allocation2 + $0x1a8] sm:$0xff] }
  0x5b   :  { %616 = vst [vmem:[#allocation8 + $0xe0] sm:$0xff] %v488_v22  ;;  %617 = vst [vmem:[#allocation8 + $0xe8] sm:$0xff] %v489_v23  ;;  %v230_v32 = vmul.f32 %v906_v7, %v90_v20  ;;  %v231_v33 = vmul.f32 %v910_v10, %v91_v21  ;;  %v364_v34 = vadd.f32 %v908_v8, %v224_v26 }
  0x5c   :  { %618 = vst [vmem:[#allocation8 + $0xf0] sm:$0xff] %v490_v24  ;;  %619 = vst [vmem:[#allocation8 + $0xf8] sm:$0xff] %v491_v25  ;;  %v365_v35 = vadd.f32 %v912_v11, %v225_v27  ;;  %v366_v36 = vadd.f32 %v908_v8, %v226_v28  ;;  %v367_v37 = vadd.f32 %v912_v11, %v227_v29  ;;  %v106_v24 = vld [vmem:[#allocation2 + $0x1b0] sm:$0xff]  ;;  %v107_v25 = vld [vmem:[#allocation2 + $0x1b8] sm:$0xff] }
  0x5d   :  { %v368_v41 = vadd.f32 %v908_v8, %v228_v30  ;;  %v369_v42 = vadd.f32 %v912_v11, %v229_v31  ;;  %v370_v43 = vadd.f32 %v908_v8, %v230_v32  ;;  %v371_v44 = vadd.f32 %v912_v11, %v231_v33 }
  0x5e   :  { %v492_v48 = vmax.f32 %v364_v34, 0.0  ;;  %v493_v49 = vmax.f32 %v365_v35, 0.0  ;;  %v494_v50 = vmax.f32 %v366_v36, 0.0  ;;  %v495_v51 = vmax.f32 %v367_v37, 0.0 }
  0x5f   :  { %v496_v54 = vmax.f32 %v368_v41, 0.0  ;;  %v497_v55 = vmax.f32 %v369_v42, 0.0  ;;  %v498_v56 = vmax.f32 %v370_v43, 0.0  ;;  %v499_v57 = vmax.f32 %v371_v44, 0.0  ;;  %v108_v42 = vld [vmem:[#allocation2 + $0x1c0] sm:$0xff]  ;;  %v109_v43 = vld [vmem:[#allocation2 + $0x1c8] sm:$0xff] }
  0x60   :  { %620 = vst [vmem:[#allocation8 + $0x100] sm:$0xff] %v492_v48  ;;  %621 = vst [vmem:[#allocation8 + $0x108] sm:$0xff] %v493_v49  ;;  %v232_v58 = vmul.f32 %v906_v7, %v92_v38  ;;  %v233_v59 = vmul.f32 %v910_v10, %v93_v39  ;;  %v234_v60 = vmul.f32 %v906_v7, %v94_v40  ;;  %v110_v44 = vld [vmem:[#allocation2 + $0x1d0] sm:$0xff]  ;;  %v111_v49 = vld [vmem:[#allocation2 + $0x1d8] sm:$0xff] }
  0x61   :  { %622 = vst [vmem:[#allocation8 + $0x110] sm:$0xff] %v494_v50  ;;  %623 = vst [vmem:[#allocation8 + $0x118] sm:$0xff] %v495_v51  ;;  %v235_v61 = vmul.f32 %v910_v10, %v95_v45  ;;  %v236_v62 = vmul.f32 %v906_v7, %v96_v46  ;;  %v237_v63 = vmul.f32 %v910_v10, %v97_v47  ;;  %v112_v50 = vld [vmem:[#allocation2 + $0x1e0] sm:$0xff]  ;;  %v113_v51 = vld [vmem:[#allocation2 + $0x1e8] sm:$0xff] }
  0x62   :  { %624 = vst [vmem:[#allocation8 + $0x120] sm:$0xff] %v496_v54  ;;  %625 = vst [vmem:[#allocation8 + $0x128] sm:$0xff] %v497_v55  ;;  %v238_v0 = vmul.f32 %v906_v7, %v98_v52  ;;  %v239_v1 = vmul.f32 %v910_v10, %v99_v53  ;;  %v372_v2 = vadd.f32 %v908_v8, %v232_v58 }
  0x63   :  { %626 = vst [vmem:[#allocation8 + $0x130] sm:$0xff] %v498_v56  ;;  %627 = vst [vmem:[#allocation8 + $0x138] sm:$0xff] %v499_v57  ;;  %v373_v3 = vadd.f32 %v912_v11, %v233_v59  ;;  %v374_v4 = vadd.f32 %v908_v8, %v234_v60  ;;  %v375_v5 = vadd.f32 %v912_v11, %v235_v61  ;;  %v114_v56 = vld [vmem:[#allocation2 + $0x1f0] sm:$0xff]  ;;  %v115_v57 = vld [vmem:[#allocation2 + $0x1f8] sm:$0xff] }
  0x64   :  { %v376_v13 = vadd.f32 %v908_v8, %v236_v62  ;;  %v377_v14 = vadd.f32 %v912_v11, %v237_v63  ;;  %v378_v15 = vadd.f32 %v908_v8, %v238_v0  ;;  %v379_v16 = vadd.f32 %v912_v11, %v239_v1 }
  0x65   :  { %v500_v20 = vmax.f32 %v372_v2, 0.0  ;;  %v501_v21 = vmax.f32 %v373_v3, 0.0  ;;  %v502_v22 = vmax.f32 %v374_v4, 0.0  ;;  %v503_v23 = vmax.f32 %v375_v5, 0.0 }
  0x66   :  { %v504_v26 = vmax.f32 %v376_v13, 0.0  ;;  %v505_v27 = vmax.f32 %v377_v14, 0.0  ;;  %v506_v28 = vmax.f32 %v378_v15, 0.0  ;;  %v507_v29 = vmax.f32 %v379_v16, 0.0  ;;  %v116_v14 = vld [vmem:[#allocation2 + $0x200] sm:$0xff]  ;;  %v117_v15 = vld [vmem:[#allocation2 + $0x208] sm:$0xff] }
  0x67   :  { %628 = vst [vmem:[#allocation8 + $0x140] sm:$0xff] %v500_v20  ;;  %629 = vst [vmem:[#allocation8 + $0x148] sm:$0xff] %v501_v21  ;;  %v240_v30 = vmul.f32 %v906_v7, %v100_v6  ;;  %v241_v31 = vmul.f32 %v910_v10, %v101_v9  ;;  %v242_v32 = vmul.f32 %v906_v7, %v102_v12  ;;  %v118_v16 = vld [vmem:[#allocation2 + $0x210] sm:$0xff]  ;;  %v119_v21 = vld [vmem:[#allocation2 + $0x218] sm:$0xff] }
  0x68   :  { %630 = vst [vmem:[#allocation8 + $0x150] sm:$0xff] %v502_v22  ;;  %631 = vst [vmem:[#allocation8 + $0x158] sm:$0xff] %v503_v23  ;;  %v243_v33 = vmul.f32 %v910_v10, %v103_v17  ;;  %v244_v34 = vmul.f32 %v906_v7, %v104_v18  ;;  %v245_v35 = vmul.f32 %v910_v10, %v105_v19  ;;  %v120_v22 = vld [vmem:[#allocation2 + $0x220] sm:$0xff]  ;;  %v121_v23 = vld [vmem:[#allocation2 + $0x228] sm:$0xff] }
  0x69   :  { %632 = vst [vmem:[#allocation8 + $0x160] sm:$0xff] %v504_v26  ;;  %633 = vst [vmem:[#allocation8 + $0x168] sm:$0xff] %v505_v27  ;;  %v246_v36 = vmul.f32 %v906_v7, %v106_v24  ;;  %v247_v37 = vmul.f32 %v910_v10, %v107_v25  ;;  %v380_v38 = vadd.f32 %v908_v8, %v240_v30 }
  0x6a   :  { %634 = vst [vmem:[#allocation8 + $0x170] sm:$0xff] %v506_v28  ;;  %635 = vst [vmem:[#allocation8 + $0x178] sm:$0xff] %v507_v29  ;;  %v381_v39 = vadd.f32 %v912_v11, %v241_v31  ;;  %v382_v40 = vadd.f32 %v908_v8, %v242_v32  ;;  %v383_v41 = vadd.f32 %v912_v11, %v243_v33  ;;  %v122_v28 = vld [vmem:[#allocation2 + $0x230] sm:$0xff]  ;;  %v123_v29 = vld [vmem:[#allocation2 + $0x238] sm:$0xff] }
  0x6b   :  { %v384_v45 = vadd.f32 %v908_v8, %v244_v34  ;;  %v385_v46 = vadd.f32 %v912_v11, %v245_v35  ;;  %v386_v47 = vadd.f32 %v908_v8, %v246_v36  ;;  %v387_v48 = vadd.f32 %v912_v11, %v247_v37 }
  0x6c   :  { %v508_v52 = vmax.f32 %v380_v38, 0.0  ;;  %v509_v53 = vmax.f32 %v381_v39, 0.0  ;;  %v510_v54 = vmax.f32 %v382_v40, 0.0  ;;  %v511_v55 = vmax.f32 %v383_v41, 0.0 }
  0x6d   :  { %v512_v58 = vmax.f32 %v384_v45, 0.0  ;;  %v513_v59 = vmax.f32 %v385_v46, 0.0  ;;  %v514_v60 = vmax.f32 %v386_v47, 0.0  ;;  %v515_v61 = vmax.f32 %v387_v48, 0.0  ;;  %v124_v46 = vld [vmem:[#allocation2 + $0x240] sm:$0xff]  ;;  %v125_v47 = vld [vmem:[#allocation2 + $0x248] sm:$0xff] }
  0x6e   :  { %636 = vst [vmem:[#allocation8 + $0x180] sm:$0xff] %v508_v52  ;;  %637 = vst [vmem:[#allocation8 + $0x188] sm:$0xff] %v509_v53  ;;  %v248_v62 = vmul.f32 %v906_v7, %v108_v42  ;;  %v249_v63 = vmul.f32 %v910_v10, %v109_v43  ;;  %v250_v0 = vmul.f32 %v906_v7, %v110_v44  ;;  %v126_v48 = vld [vmem:[#allocation2 + $0x250] sm:$0xff]  ;;  %v127_v53 = vld [vmem:[#allocation2 + $0x258] sm:$0xff] }
  0x6f   :  { %638 = vst [vmem:[#allocation8 + $0x190] sm:$0xff] %v510_v54  ;;  %639 = vst [vmem:[#allocation8 + $0x198] sm:$0xff] %v511_v55  ;;  %v251_v1 = vmul.f32 %v910_v10, %v111_v49  ;;  %v252_v2 = vmul.f32 %v906_v7, %v112_v50  ;;  %v253_v3 = vmul.f32 %v910_v10, %v113_v51  ;;  %v128_v54 = vld [vmem:[#allocation2 + $0x260] sm:$0xff]  ;;  %v129_v55 = vld [vmem:[#allocation2 + $0x268] sm:$0xff] }
  0x70   :  { %640 = vst [vmem:[#allocation8 + $0x1a0] sm:$0xff] %v512_v58  ;;  %641 = vst [vmem:[#allocation8 + $0x1a8] sm:$0xff] %v513_v59  ;;  %v254_v4 = vmul.f32 %v906_v7, %v114_v56  ;;  %v255_v5 = vmul.f32 %v910_v10, %v115_v57  ;;  %v388_v6 = vadd.f32 %v908_v8, %v248_v62 }
  0x71   :  { %642 = vst [vmem:[#allocation8 + $0x1b0] sm:$0xff] %v514_v60  ;;  %643 = vst [vmem:[#allocation8 + $0x1b8] sm:$0xff] %v515_v61  ;;  %v389_v9 = vadd.f32 %v912_v11, %v249_v63  ;;  %v390_v12 = vadd.f32 %v908_v8, %v250_v0  ;;  %v391_v13 = vadd.f32 %v912_v11, %v251_v1  ;;  %v130_v60 = vld [vmem:[#allocation2 + $0x270] sm:$0xff]  ;;  %v131_v61 = vld [vmem:[#allocation2 + $0x278] sm:$0xff] }
  0x72   :  { %v392_v17 = vadd.f32 %v908_v8, %v252_v2  ;;  %v393_v18 = vadd.f32 %v912_v11, %v253_v3  ;;  %v394_v19 = vadd.f32 %v908_v8, %v254_v4  ;;  %v395_v20 = vadd.f32 %v912_v11, %v255_v5 }
  0x73   :  { %v516_v24 = vmax.f32 %v388_v6, 0.0  ;;  %v517_v25 = vmax.f32 %v389_v9, 0.0  ;;  %v518_v26 = vmax.f32 %v390_v12, 0.0  ;;  %v519_v27 = vmax.f32 %v391_v13, 0.0 }
  0x74   :  { %v520_v30 = vmax.f32 %v392_v17, 0.0  ;;  %v521_v31 = vmax.f32 %v393_v18, 0.0  ;;  %v522_v32 = vmax.f32 %v394_v19, 0.0  ;;  %v523_v33 = vmax.f32 %v395_v20, 0.0  ;;  %v132_v18 = vld [vmem:[#allocation2 + $0x280] sm:$0xff]  ;;  %v133_v19 = vld [vmem:[#allocation2 + $0x288] sm:$0xff] }
  0x75   :  { %644 = vst [vmem:[#allocation8 + $0x1c0] sm:$0xff] %v516_v24  ;;  %645 = vst [vmem:[#allocation8 + $0x1c8] sm:$0xff] %v517_v25  ;;  %v256_v34 = vmul.f32 %v906_v7, %v116_v14  ;;  %v257_v35 = vmul.f32 %v910_v10, %v117_v15  ;;  %v258_v36 = vmul.f32 %v906_v7, %v118_v16  ;;  %v134_v20 = vld [vmem:[#allocation2 + $0x290] sm:$0xff]  ;;  %v135_v25 = vld [vmem:[#allocation2 + $0x298] sm:$0xff] }
  0x76   :  { %646 = vst [vmem:[#allocation8 + $0x1d0] sm:$0xff] %v518_v26  ;;  %647 = vst [vmem:[#allocation8 + $0x1d8] sm:$0xff] %v519_v27  ;;  %v259_v37 = vmul.f32 %v910_v10, %v119_v21  ;;  %v260_v38 = vmul.f32 %v906_v7, %v120_v22  ;;  %v261_v39 = vmul.f32 %v910_v10, %v121_v23  ;;  %v136_v26 = vld [vmem:[#allocation2 + $0x2a0] sm:$0xff]  ;;  %v137_v27 = vld [vmem:[#allocation2 + $0x2a8] sm:$0xff] }
  0x77   :  { %648 = vst [vmem:[#allocation8 + $0x1e0] sm:$0xff] %v520_v30  ;;  %649 = vst [vmem:[#allocation8 + $0x1e8] sm:$0xff] %v521_v31  ;;  %v262_v40 = vmul.f32 %v906_v7, %v122_v28  ;;  %v263_v41 = vmul.f32 %v910_v10, %v123_v29  ;;  %v396_v42 = vadd.f32 %v908_v8, %v256_v34 }
  0x78   :  { %650 = vst [vmem:[#allocation8 + $0x1f0] sm:$0xff] %v522_v32  ;;  %651 = vst [vmem:[#allocation8 + $0x1f8] sm:$0xff] %v523_v33  ;;  %v397_v43 = vadd.f32 %v912_v11, %v257_v35  ;;  %v398_v44 = vadd.f32 %v908_v8, %v258_v36  ;;  %v399_v45 = vadd.f32 %v912_v11, %v259_v37  ;;  %v138_v32 = vld [vmem:[#allocation2 + $0x2b0] sm:$0xff]  ;;  %v139_v33 = vld [vmem:[#allocation2 + $0x2b8] sm:$0xff] }
  0x79   :  { %v400_v49 = vadd.f32 %v908_v8, %v260_v38  ;;  %v401_v50 = vadd.f32 %v912_v11, %v261_v39  ;;  %v402_v51 = vadd.f32 %v908_v8, %v262_v40  ;;  %v403_v52 = vadd.f32 %v912_v11, %v263_v41 }
  0x7a   :  { %v524_v56 = vmax.f32 %v396_v42, 0.0  ;;  %v525_v57 = vmax.f32 %v397_v43, 0.0  ;;  %v526_v58 = vmax.f32 %v398_v44, 0.0  ;;  %v527_v59 = vmax.f32 %v399_v45, 0.0 }
  0x7b   :  { %v528_v62 = vmax.f32 %v400_v49, 0.0  ;;  %v529_v63 = vmax.f32 %v401_v50, 0.0  ;;  %v530_v0 = vmax.f32 %v402_v51, 0.0  ;;  %v531_v1 = vmax.f32 %v403_v52, 0.0  ;;  %v140_v50 = vld [vmem:[#allocation2 + $0x2c0] sm:$0xff]  ;;  %v141_v51 = vld [vmem:[#allocation2 + $0x2c8] sm:$0xff] }
  0x7c   :  { %652 = vst [vmem:[#allocation8 + $0x200] sm:$0xff] %v524_v56  ;;  %653 = vst [vmem:[#allocation8 + $0x208] sm:$0xff] %v525_v57  ;;  %v264_v2 = vmul.f32 %v906_v7, %v124_v46  ;;  %v265_v3 = vmul.f32 %v910_v10, %v125_v47  ;;  %v266_v4 = vmul.f32 %v906_v7, %v126_v48  ;;  %v142_v52 = vld [vmem:[#allocation2 + $0x2d0] sm:$0xff]  ;;  %v143_v57 = vld [vmem:[#allocation2 + $0x2d8] sm:$0xff] }
  0x7d   :  { %654 = vst [vmem:[#allocation8 + $0x210] sm:$0xff] %v526_v58  ;;  %655 = vst [vmem:[#allocation8 + $0x218] sm:$0xff] %v527_v59  ;;  %v267_v5 = vmul.f32 %v910_v10, %v127_v53  ;;  %v268_v6 = vmul.f32 %v906_v7, %v128_v54  ;;  %v269_v9 = vmul.f32 %v910_v10, %v129_v55  ;;  %v144_v58 = vld [vmem:[#allocation2 + $0x2e0] sm:$0xff]  ;;  %v145_v59 = vld [vmem:[#allocation2 + $0x2e8] sm:$0xff] }
  0x7e   :  { %656 = vst [vmem:[#allocation8 + $0x220] sm:$0xff] %v528_v62  ;;  %657 = vst [vmem:[#allocation8 + $0x228] sm:$0xff] %v529_v63  ;;  %v270_v12 = vmul.f32 %v906_v7, %v130_v60  ;;  %v271_v13 = vmul.f32 %v910_v10, %v131_v61  ;;  %v404_v14 = vadd.f32 %v908_v8, %v264_v2 }
  0x7f   :  { %658 = vst [vmem:[#allocation8 + $0x230] sm:$0xff] %v530_v0  ;;  %659 = vst [vmem:[#allocation8 + $0x238] sm:$0xff] %v531_v1  ;;  %v405_v15 = vadd.f32 %v912_v11, %v265_v3  ;;  %v406_v16 = vadd.f32 %v908_v8, %v266_v4  ;;  %v407_v17 = vadd.f32 %v912_v11, %v267_v5  ;;  %v146_v0 = vld [vmem:[#allocation2 + $0x2f0] sm:$0xff]  ;;  %v147_v1 = vld [vmem:[#allocation2 + $0x2f8] sm:$0xff] }
  0x80   :  { %v408_v21 = vadd.f32 %v908_v8, %v268_v6  ;;  %v409_v22 = vadd.f32 %v912_v11, %v269_v9  ;;  %v410_v23 = vadd.f32 %v908_v8, %v270_v12  ;;  %v411_v24 = vadd.f32 %v912_v11, %v271_v13 }
  0x81   :  { %v532_v28 = vmax.f32 %v404_v14, 0.0  ;;  %v533_v29 = vmax.f32 %v405_v15, 0.0  ;;  %v534_v30 = vmax.f32 %v406_v16, 0.0  ;;  %v535_v31 = vmax.f32 %v407_v17, 0.0 }
  0x82   :  { %v536_v34 = vmax.f32 %v408_v21, 0.0  ;;  %v537_v35 = vmax.f32 %v409_v22, 0.0  ;;  %v538_v36 = vmax.f32 %v410_v23, 0.0  ;;  %v539_v37 = vmax.f32 %v411_v24, 0.0  ;;  %v148_v22 = vld [vmem:[#allocation2 + $0x300] sm:$0xff]  ;;  %v149_v23 = vld [vmem:[#allocation2 + $0x308] sm:$0xff] }
  0x83   :  { %660 = vst [vmem:[#allocation8 + $0x240] sm:$0xff] %v532_v28  ;;  %661 = vst [vmem:[#allocation8 + $0x248] sm:$0xff] %v533_v29  ;;  %v272_v38 = vmul.f32 %v906_v7, %v132_v18  ;;  %v273_v39 = vmul.f32 %v910_v10, %v133_v19  ;;  %v274_v40 = vmul.f32 %v906_v7, %v134_v20  ;;  %v150_v24 = vld [vmem:[#allocation2 + $0x310] sm:$0xff]  ;;  %v151_v29 = vld [vmem:[#allocation2 + $0x318] sm:$0xff] }
  0x84   :  { %662 = vst [vmem:[#allocation8 + $0x250] sm:$0xff] %v534_v30  ;;  %663 = vst [vmem:[#allocation8 + $0x258] sm:$0xff] %v535_v31  ;;  %v275_v41 = vmul.f32 %v910_v10, %v135_v25  ;;  %v276_v42 = vmul.f32 %v906_v7, %v136_v26  ;;  %v277_v43 = vmul.f32 %v910_v10, %v137_v27  ;;  %v152_v30 = vld [vmem:[#allocation2 + $0x320] sm:$0xff]  ;;  %v153_v31 = vld [vmem:[#allocation2 + $0x328] sm:$0xff] }
  0x85   :  { %664 = vst [vmem:[#allocation8 + $0x260] sm:$0xff] %v536_v34  ;;  %665 = vst [vmem:[#allocation8 + $0x268] sm:$0xff] %v537_v35  ;;  %v278_v44 = vmul.f32 %v906_v7, %v138_v32  ;;  %v279_v45 = vmul.f32 %v910_v10, %v139_v33  ;;  %v412_v46 = vadd.f32 %v908_v8, %v272_v38 }
  0x86   :  { %666 = vst [vmem:[#allocation8 + $0x270] sm:$0xff] %v538_v36  ;;  %667 = vst [vmem:[#allocation8 + $0x278] sm:$0xff] %v539_v37  ;;  %v413_v47 = vadd.f32 %v912_v11, %v273_v39  ;;  %v414_v48 = vadd.f32 %v908_v8, %v274_v40  ;;  %v415_v49 = vadd.f32 %v912_v11, %v275_v41  ;;  %v154_v36 = vld [vmem:[#allocation2 + $0x330] sm:$0xff]  ;;  %v155_v37 = vld [vmem:[#allocation2 + $0x338] sm:$0xff] }
  0x87   :  { %v416_v53 = vadd.f32 %v908_v8, %v276_v42  ;;  %v417_v54 = vadd.f32 %v912_v11, %v277_v43  ;;  %v418_v55 = vadd.f32 %v908_v8, %v278_v44  ;;  %v419_v56 = vadd.f32 %v912_v11, %v279_v45 }
  0x88   :  { %v540_v60 = vmax.f32 %v412_v46, 0.0  ;;  %v541_v61 = vmax.f32 %v413_v47, 0.0  ;;  %v542_v62 = vmax.f32 %v414_v48, 0.0  ;;  %v543_v63 = vmax.f32 %v415_v49, 0.0 }
  0x89   :  { %v544_v2 = vmax.f32 %v416_v53, 0.0  ;;  %v545_v3 = vmax.f32 %v417_v54, 0.0  ;;  %v546_v4 = vmax.f32 %v418_v55, 0.0  ;;  %v547_v5 = vmax.f32 %v419_v56, 0.0  ;;  %v156_v54 = vld [vmem:[#allocation2 + $0x340] sm:$0xff]  ;;  %v157_v55 = vld [vmem:[#allocation2 + $0x348] sm:$0xff] }
  0x8a   :  { %668 = vst [vmem:[#allocation8 + $0x280] sm:$0xff] %v540_v60  ;;  %669 = vst [vmem:[#allocation8 + $0x288] sm:$0xff] %v541_v61  ;;  %v280_v6 = vmul.f32 %v906_v7, %v140_v50  ;;  %v281_v9 = vmul.f32 %v910_v10, %v141_v51  ;;  %v282_v12 = vmul.f32 %v906_v7, %v142_v52  ;;  %v158_v56 = vld [vmem:[#allocation2 + $0x350] sm:$0xff]  ;;  %v159_v61 = vld [vmem:[#allocation2 + $0x358] sm:$0xff] }
  0x8b   :  { %670 = vst [vmem:[#allocation8 + $0x290] sm:$0xff] %v542_v62  ;;  %671 = vst [vmem:[#allocation8 + $0x298] sm:$0xff] %v543_v63  ;;  %v283_v13 = vmul.f32 %v910_v10, %v143_v57  ;;  %v284_v14 = vmul.f32 %v906_v7, %v144_v58  ;;  %v285_v15 = vmul.f32 %v910_v10, %v145_v59  ;;  %v160_v62 = vld [vmem:[#allocation2 + $0x360] sm:$0xff]  ;;  %v161_v63 = vld [vmem:[#allocation2 + $0x368] sm:$0xff] }
  0x8c   :  { %672 = vst [vmem:[#allocation8 + $0x2a0] sm:$0xff] %v544_v2  ;;  %673 = vst [vmem:[#allocation8 + $0x2a8] sm:$0xff] %v545_v3  ;;  %v286_v16 = vmul.f32 %v906_v7, %v146_v0  ;;  %v287_v17 = vmul.f32 %v910_v10, %v147_v1  ;;  %v420_v18 = vadd.f32 %v908_v8, %v280_v6 }
  0x8d   :  { %674 = vst [vmem:[#allocation8 + $0x2b0] sm:$0xff] %v546_v4  ;;  %675 = vst [vmem:[#allocation8 + $0x2b8] sm:$0xff] %v547_v5  ;;  %v421_v19 = vadd.f32 %v912_v11, %v281_v9  ;;  %v422_v20 = vadd.f32 %v908_v8, %v282_v12  ;;  %v423_v21 = vadd.f32 %v912_v11, %v283_v13  ;;  %v162_v4 = vld [vmem:[#allocation2 + $0x370] sm:$0xff]  ;;  %v163_v5 = vld [vmem:[#allocation2 + $0x378] sm:$0xff] }
  0x8e   :  { %v424_v25 = vadd.f32 %v908_v8, %v284_v14  ;;  %v425_v26 = vadd.f32 %v912_v11, %v285_v15  ;;  %v426_v27 = vadd.f32 %v908_v8, %v286_v16  ;;  %v427_v28 = vadd.f32 %v912_v11, %v287_v17 }
  0x8f   :  { %v548_v32 = vmax.f32 %v420_v18, 0.0  ;;  %v549_v33 = vmax.f32 %v421_v19, 0.0  ;;  %v550_v34 = vmax.f32 %v422_v20, 0.0  ;;  %v551_v35 = vmax.f32 %v423_v21, 0.0 }
  0x90   :  { %v552_v38 = vmax.f32 %v424_v25, 0.0  ;;  %v553_v39 = vmax.f32 %v425_v26, 0.0  ;;  %v554_v40 = vmax.f32 %v426_v27, 0.0  ;;  %v555_v41 = vmax.f32 %v427_v28, 0.0  ;;  %v164_v26 = vld [vmem:[#allocation2 + $0x380] sm:$0xff]  ;;  %v165_v27 = vld [vmem:[#allocation2 + $0x388] sm:$0xff] }
  0x91   :  { %676 = vst [vmem:[#allocation8 + $0x2c0] sm:$0xff] %v548_v32  ;;  %677 = vst [vmem:[#allocation8 + $0x2c8] sm:$0xff] %v549_v33  ;;  %v288_v42 = vmul.f32 %v906_v7, %v148_v22  ;;  %v289_v43 = vmul.f32 %v910_v10, %v149_v23  ;;  %v290_v44 = vmul.f32 %v906_v7, %v150_v24  ;;  %v166_v28 = vld [vmem:[#allocation2 + $0x390] sm:$0xff]  ;;  %v167_v33 = vld [vmem:[#allocation2 + $0x398] sm:$0xff] }
  0x92   :  { %678 = vst [vmem:[#allocation8 + $0x2d0] sm:$0xff] %v550_v34  ;;  %679 = vst [vmem:[#allocation8 + $0x2d8] sm:$0xff] %v551_v35  ;;  %v291_v45 = vmul.f32 %v910_v10, %v151_v29  ;;  %v292_v46 = vmul.f32 %v906_v7, %v152_v30  ;;  %v293_v47 = vmul.f32 %v910_v10, %v153_v31  ;;  %v168_v34 = vld [vmem:[#allocation2 + $0x3a0] sm:$0xff]  ;;  %v169_v35 = vld [vmem:[#allocation2 + $0x3a8] sm:$0xff] }
  0x93   :  { %680 = vst [vmem:[#allocation8 + $0x2e0] sm:$0xff] %v552_v38  ;;  %681 = vst [vmem:[#allocation8 + $0x2e8] sm:$0xff] %v553_v39  ;;  %v294_v48 = vmul.f32 %v906_v7, %v154_v36  ;;  %v295_v49 = vmul.f32 %v910_v10, %v155_v37  ;;  %v428_v50 = vadd.f32 %v908_v8, %v288_v42 }
  0x94   :  { %682 = vst [vmem:[#allocation8 + $0x2f0] sm:$0xff] %v554_v40  ;;  %683 = vst [vmem:[#allocation8 + $0x2f8] sm:$0xff] %v555_v41  ;;  %v429_v51 = vadd.f32 %v912_v11, %v289_v43  ;;  %v430_v52 = vadd.f32 %v908_v8, %v290_v44  ;;  %v431_v53 = vadd.f32 %v912_v11, %v291_v45  ;;  %v170_v40 = vld [vmem:[#allocation2 + $0x3b0] sm:$0xff]  ;;  %v171_v41 = vld [vmem:[#allocation2 + $0x3b8] sm:$0xff] }
  0x95   :  { %v432_v57 = vadd.f32 %v908_v8, %v292_v46  ;;  %v433_v58 = vadd.f32 %v912_v11, %v293_v47  ;;  %v434_v59 = vadd.f32 %v908_v8, %v294_v48  ;;  %v435_v60 = vadd.f32 %v912_v11, %v295_v49 }
  0x96   :  { %v556_v0 = vmax.f32 %v428_v50, 0.0  ;;  %v557_v1 = vmax.f32 %v429_v51, 0.0  ;;  %v558_v2 = vmax.f32 %v430_v52, 0.0  ;;  %v559_v3 = vmax.f32 %v431_v53, 0.0 }
  0x97   :  { %v560_v6 = vmax.f32 %v432_v57, 0.0  ;;  %v561_v9 = vmax.f32 %v433_v58, 0.0  ;;  %v562_v12 = vmax.f32 %v434_v59, 0.0  ;;  %v563_v13 = vmax.f32 %v435_v60, 0.0  ;;  %v172_v58 = vld [vmem:[#allocation2 + $0x3c0] sm:$0xff]  ;;  %v173_v59 = vld [vmem:[#allocation2 + $0x3c8] sm:$0xff] }
  0x98   :  { %684 = vst [vmem:[#allocation8 + $0x300] sm:$0xff] %v556_v0  ;;  %685 = vst [vmem:[#allocation8 + $0x308] sm:$0xff] %v557_v1  ;;  %v296_v14 = vmul.f32 %v906_v7, %v156_v54  ;;  %v297_v15 = vmul.f32 %v910_v10, %v157_v55  ;;  %v298_v16 = vmul.f32 %v906_v7, %v158_v56  ;;  %v174_v60 = vld [vmem:[#allocation2 + $0x3d0] sm:$0xff]  ;;  %v175_v1 = vld [vmem:[#allocation2 + $0x3d8] sm:$0xff] }
  0x99   :  { %686 = vst [vmem:[#allocation8 + $0x310] sm:$0xff] %v558_v2  ;;  %687 = vst [vmem:[#allocation8 + $0x318] sm:$0xff] %v559_v3  ;;  %v299_v17 = vmul.f32 %v910_v10, %v159_v61  ;;  %v300_v18 = vmul.f32 %v906_v7, %v160_v62  ;;  %v301_v19 = vmul.f32 %v910_v10, %v161_v63  ;;  %v176_v2 = vld [vmem:[#allocation2 + $0x3e0] sm:$0xff]  ;;  %v177_v3 = vld [vmem:[#allocation2 + $0x3e8] sm:$0xff] }
  0x9a   :  { %688 = vst [vmem:[#allocation8 + $0x320] sm:$0xff] %v560_v6  ;;  %689 = vst [vmem:[#allocation8 + $0x328] sm:$0xff] %v561_v9  ;;  %v302_v20 = vmul.f32 %v906_v7, %v162_v4  ;;  %v303_v21 = vmul.f32 %v910_v10, %v163_v5  ;;  %v436_v22 = vadd.f32 %v908_v8, %v296_v14 }
  0x9b   :  { %690 = vst [vmem:[#allocation8 + $0x330] sm:$0xff] %v562_v12  ;;  %691 = vst [vmem:[#allocation8 + $0x338] sm:$0xff] %v563_v13  ;;  %v437_v23 = vadd.f32 %v912_v11, %v297_v15  ;;  %v438_v24 = vadd.f32 %v908_v8, %v298_v16  ;;  %v439_v25 = vadd.f32 %v912_v11, %v299_v17  ;;  %v178_v12 = vld [vmem:[#allocation2 + $0x3f0] sm:$0xff]  ;;  %v179_v13 = vld [vmem:[#allocation2 + $0x3f8] sm:$0xff] }
  0x9c   :  { %v440_v29 = vadd.f32 %v908_v8, %v300_v18  ;;  %v441_v30 = vadd.f32 %v912_v11, %v301_v19  ;;  %v442_v31 = vadd.f32 %v908_v8, %v302_v20  ;;  %v443_v32 = vadd.f32 %v912_v11, %v303_v21 }
  0x9d   :  { %v564_v36 = vmax.f32 %v436_v22, 0.0  ;;  %v565_v37 = vmax.f32 %v437_v23, 0.0  ;;  %v566_v38 = vmax.f32 %v438_v24, 0.0  ;;  %v567_v39 = vmax.f32 %v439_v25, 0.0 }
  0x9e   :  { %v568_v42 = vmax.f32 %v440_v29, 0.0  ;;  %v569_v43 = vmax.f32 %v441_v30, 0.0  ;;  %v570_v44 = vmax.f32 %v442_v31, 0.0  ;;  %v571_v45 = vmax.f32 %v443_v32, 0.0 }
  0x9f   :  { %692 = vst [vmem:[#allocation8 + $0x340] sm:$0xff] %v564_v36  ;;  %693 = vst [vmem:[#allocation8 + $0x348] sm:$0xff] %v565_v37  ;;  %v304_v46 = vmul.f32 %v906_v7, %v164_v26  ;;  %v305_v47 = vmul.f32 %v910_v10, %v165_v27  ;;  %v306_v48 = vmul.f32 %v906_v7, %v166_v28 }
  0xa0   :  { %694 = vst [vmem:[#allocation8 + $0x350] sm:$0xff] %v566_v38  ;;  %695 = vst [vmem:[#allocation8 + $0x358] sm:$0xff] %v567_v39  ;;  %v307_v49 = vmul.f32 %v910_v10, %v167_v33  ;;  %v308_v50 = vmul.f32 %v906_v7, %v168_v34  ;;  %v309_v51 = vmul.f32 %v910_v10, %v169_v35 }
  0xa1   :  { %696 = vst [vmem:[#allocation8 + $0x360] sm:$0xff] %v568_v42  ;;  %697 = vst [vmem:[#allocation8 + $0x368] sm:$0xff] %v569_v43  ;;  %v310_v52 = vmul.f32 %v906_v7, %v170_v40  ;;  %v311_v53 = vmul.f32 %v910_v10, %v171_v41  ;;  %v444_v54 = vadd.f32 %v908_v8, %v304_v46 }
  0xa2   :  { %698 = vst [vmem:[#allocation8 + $0x370] sm:$0xff] %v570_v44  ;;  %699 = vst [vmem:[#allocation8 + $0x378] sm:$0xff] %v571_v45  ;;  %v445_v55 = vadd.f32 %v912_v11, %v305_v47  ;;  %v446_v56 = vadd.f32 %v908_v8, %v306_v48  ;;  %v447_v57 = vadd.f32 %v912_v11, %v307_v49 }
  0xa3   :  { %v448_v61 = vadd.f32 %v908_v8, %v308_v50  ;;  %v449_v62 = vadd.f32 %v912_v11, %v309_v51  ;;  %v450_v63 = vadd.f32 %v908_v8, %v310_v52  ;;  %v451_v0 = vadd.f32 %v912_v11, %v311_v53 }
  0xa4   :  { %v572_v4 = vmax.f32 %v444_v54, 0.0  ;;  %v573_v5 = vmax.f32 %v445_v55, 0.0  ;;  %v574_v6 = vmax.f32 %v446_v56, 0.0  ;;  %v575_v9 = vmax.f32 %v447_v57, 0.0 }
  0xa5   :  { %v576_v14 = vmax.f32 %v448_v61, 0.0  ;;  %v577_v15 = vmax.f32 %v449_v62, 0.0  ;;  %v578_v16 = vmax.f32 %v450_v63, 0.0  ;;  %v579_v17 = vmax.f32 %v451_v0, 0.0 }
  0xa6   :  { %700 = vst [vmem:[#allocation8 + $0x380] sm:$0xff] %v572_v4  ;;  %701 = vst [vmem:[#allocation8 + $0x388] sm:$0xff] %v573_v5  ;;  %v312_v18 = vmul.f32 %v906_v7, %v172_v58  ;;  %v313_v19 = vmul.f32 %v910_v10, %v173_v59  ;;  %v314_v20 = vmul.f32 %v906_v7, %v174_v60 }
  0xa7   :  { %702 = vst [vmem:[#allocation8 + $0x390] sm:$0xff] %v574_v6  ;;  %703 = vst [vmem:[#allocation8 + $0x398] sm:$0xff] %v575_v9  ;;  %v315_v21 = vmul.f32 %v910_v10, %v175_v1  ;;  %v316_v22 = vmul.f32 %v906_v7, %v176_v2  ;;  %v317_v23 = vmul.f32 %v910_v10, %v177_v3 }
  0xa8   :  { %704 = vst [vmem:[#allocation8 + $0x3a0] sm:$0xff] %v576_v14  ;;  %705 = vst [vmem:[#allocation8 + $0x3a8] sm:$0xff] %v577_v15  ;;  %v318_v24 = vmul.f32 %v906_v7, %v178_v12  ;;  %v319_v25 = vmul.f32 %v910_v10, %v179_v13  ;;  %v452_v26 = vadd.f32 %v908_v8, %v312_v18 }
  0xa9   :  { %706 = vst [vmem:[#allocation8 + $0x3b0] sm:$0xff] %v578_v16  ;;  %707 = vst [vmem:[#allocation8 + $0x3b8] sm:$0xff] %v579_v17  ;;  %v453_v27 = vadd.f32 %v912_v11, %v313_v19  ;;  %v454_v28 = vadd.f32 %v908_v8, %v314_v20  ;;  %v455_v29 = vadd.f32 %v912_v11, %v315_v21 }
  0xaa   :  { %v456_v30 = vadd.f32 %v908_v8, %v316_v22  ;;  %v457_v31 = vadd.f32 %v912_v11, %v317_v23  ;;  %v458_v32 = vadd.f32 %v908_v8, %v318_v24  ;;  %v459_v7 = vadd.f32 %v912_v11, %v319_v25 }
  0xab   :  { %v580_v33 = vmax.f32 %v452_v26, 0.0  ;;  %v581_v10 = vmax.f32 %v453_v27, 0.0  ;;  %v582_v34 = vmax.f32 %v454_v28, 0.0  ;;  %v583_v35 = vmax.f32 %v455_v29, 0.0 }
  0xac   :  { %v584_v36 = vmax.f32 %v456_v30, 0.0  ;;  %v585_v37 = vmax.f32 %v457_v31, 0.0  ;;  %v586_v38 = vmax.f32 %v458_v32, 0.0  ;;  %v587_v39 = vmax.f32 %v459_v7, 0.0 }
  0xad   :  { %708 = vst [vmem:[#allocation8 + $0x3c0] sm:$0xff] %v580_v33  ;;  %709 = vst [vmem:[#allocation8 + $0x3c8] sm:$0xff] %v581_v10 }
  0xae   :  { %710 = vst [vmem:[#allocation8 + $0x3d0] sm:$0xff] %v582_v34  ;;  %711 = vst [vmem:[#allocation8 + $0x3d8] sm:$0xff] %v583_v35 }
  0xaf   :  { %712 = vst [vmem:[#allocation8 + $0x3e0] sm:$0xff] %v584_v36  ;;  %713 = vst [vmem:[#allocation8 + $0x3e8] sm:$0xff] %v585_v37 }
  0xb0   :  { %714 = vst [vmem:[#allocation8 + $0x3f0] sm:$0xff] %v586_v38  ;;  %715 = vst [vmem:[#allocation8 + $0x3f8] sm:$0xff] %v587_v39 }
  0xb1   :  { %817 = shalt.err (!%p814_p0)
}
  0xb2   :  { %s818_s25 = scalar_lea.hbm %s1188_s3, 16384 }
  0xb3   :  { %p819_p1 = scmp.ne.s32.totalorder %s1188_s3, %s818_s25  ;;  %p822_p2 = scmp.lt.u32.totalorder %s818_s25, %s1188_s3 }
  0xb5   :  { %p824_p3 = pnand %p822_p2, %p819_p1 }
  0xb7   :  { %827 = shalt.err (!%p824_p3)
}
  0xb8   :  { %727 = dma.vmem_to_hbm [thread:$0]  %s722_s21, 16384, %s1188_s3, [#allocation4], %s836_s1, %s836_s1, %s837_s7  }
  0xb9   :  { %832 = dma.done.wait [#allocation4], 16384  }
  0xba   :  { %833 = vsyncadd [#allocation4], 4294950912 }
  0xbb   :  { %731 = vsyncpa [#allocation3], 1 }
  0xbc   :  { %732 = vsyncpa [#allocation6], 1 }
  0xbd   :  { %733 = vsyncpa [#allocation4], 1 }

// kernel: up_conv_forward.2
= control target key start
LH: loop header
LB: loop body
LE: loop exit
PB: predicated region body
PF: predicated region fallthrough
CT: control target
= control target key end

     0   :  { %9 = vsyncpa [#allocation4], 0  ;;  %s2734_s0 = inlined_call_operand.hbm [shape: bf16[512,36], index: 0, kind: input, shape index: {}]   ;;  %s2735_s1 = inlined_call_operand.hbm [shape: bf16[36,256], index: 1, kind: input, shape index: {}]   ;;  %s2736_s2 = inlined_call_operand.hbm [shape: f32[512,256], index: 2, kind: output, shape index: {0}]   ;;  %s2737_s3 = inlined_call_operand.hbm [shape: f32[8,256], index: 3, kind: output, shape index: {1}]  }
   0x1   :  { %10 = vsyncpa [#allocation7], 0 }
   0x2   :  { %11 = vsyncpa [#allocation5], 0 }
   0x3   :  { %12 = vsyncpa [#allocation10], 0  ;;  %s2200_s12 = smov [#allocation3]   ;;  %s2104_s16 = scalar_lea.hbm %s2734_s0, 4096 }
   0x4   :  { %s18_s13 = sshll.u32 %s2200_s12, 4  ;;  %p2105_p0 = scmp.ne.s32.totalorder %s2734_s0, %s2104_s16  ;;  %s19_s13 = int_to_ptr.vmem [resolvable:$true] %s18_s13 }
   0x5   :  { %p2108_p1 = scmp.lt.u32.totalorder %s2104_s16, %s2734_s0 }
   0x7   :  { %p2110_p2 = pnand %p2108_p1, %p2105_p0 }
   0x9   :  { %2113 = shalt.err (!%p2110_p2)
}
   0xa   :  { %s2114_s21 = scalar_lea.vmem %s19_s13, 4096  ;;  %p2119_p4 = scmp.lt.s32.totalorder %s19_s13, %s19_s13 }
   0xb   :  { %p2115_p3 = scmp.ne.s32.totalorder %s19_s13, %s2114_s21  ;;  %p2120_p5 = scmp.lt.s32.totalorder %s2114_s21, %s2114_s21 }
   0xd   :  { %p2121_p6 = por %p2120_p5, %p2119_p4 }
   0xf   :  { %p2122_p7 = pnand %p2121_p6, %p2115_p3 }
  0x11   :  { %2125 = shalt.err (!%p2122_p7)
}
  0x12   :  { %s2201_s22 = smov 64   ;;  %s2202_s23 = smov 4  }
  0x13   :  { %24 = dma.hbm_to_vmem [thread:$0]  %s2734_s0, 4096, %s19_s13, [#allocation4], %s2201_s22, %s2201_s22, %s2202_s23  }
  0x14   :  { %s2203_s26 = smov [#allocation6]   ;;  %s2126_s30 = scalar_lea.hbm %s2735_s1, 640 }
  0x15   :  { %s30_s27 = sshll.u32 %s2203_s26, 4  ;;  %p2127_p8 = scmp.ne.s32.totalorder %s2735_s1, %s2126_s30  ;;  %s31_s27 = int_to_ptr.vmem [resolvable:$true] %s30_s27 }
  0x16   :  { %p2130_p9 = scmp.lt.u32.totalorder %s2126_s30, %s2735_s1 }
  0x18   :  { %p2132_p10 = pnand %p2130_p9, %p2127_p8 }
  0x1a   :  { %2135 = shalt.err (!%p2132_p10)
}
  0x1b   :  { %s2136_s8 = scalar_lea.vmem %s31_s27, 640  ;;  %p2141_p12 = scmp.lt.s32.totalorder %s31_s27, %s31_s27 }
  0x1c   :  { %p2137_p11 = scmp.ne.s32.totalorder %s31_s27, %s2136_s8  ;;  %p2142_p13 = scmp.lt.s32.totalorder %s2136_s8, %s2136_s8 }
  0x1e   :  { %p2143_p0 = por %p2142_p13, %p2141_p12 }
  0x20   :  { %p2144_p1 = pnand %p2143_p0, %p2137_p11 }
  0x22   :  { %2147 = shalt.err (!%p2144_p1)
}
  0x23   :  { %s2204_s0 = smov 128   ;;  %s2205_s9 = smov 8  }
  0x24   :  { %36 = dma.hbm_to_vmem [thread:$0]  %s2735_s1, 640, %s31_s27, [#allocation7], %s2204_s0, %s2204_s0, %s2205_s9  }
  0x25   :  { %2192 = dma.done.wait [#allocation4], 4096  }
  0x26   :  { %2193 = vsyncadd [#allocation4], 4294963200 }
  0x27   :  { %2194 = dma.done.wait [#allocation7], 640  }
  0x28   :  { %2195 = vsyncadd [#allocation7], 4294966656  ;;  %v2206_v0 = vmov 0   ;;  %v2064_v1 = vld [vmem:[#allocation6 + $0x4] ss:$8 sps:$4 sm:$0xff]   ;;  %vm655_vm0 = vcmask 1041408  }
  0x29   :  { %694 = vmatprep.mubr.bf16.mxu0 %v2206_v0  ;;  %854 = vmatprep.mubr.bf16.mxu1 %v2206_v0  ;;  %v2066_v2 = vld [vmem:[#allocation6] ss:$8 sps:$4 sm:$0xff]   ;;  %v2067_v3 = vld [vmem:[#allocation6 + $0x14] ss:$8 sps:$4 sm:$0xff]   ;;  %v2069_v5 = vld [vmem:[#allocation6 + $0x10] ss:$8 sps:$4 sm:$0xff]  }
  0x2a   :  { %662 = vmatprep.subr.bf16.mxu0 %v2064_v1  ;;  %v372_v4 = vld [vmem:[#allocation6 + $0x20] sm:$0x33]  ;;  %2047 = vmatprep.subr.bf16.mxu1 %v2064_v1  ;;  %vm558_vm1 = vcmask 293888   ;;  %v2073_v11 = vld [vmem:[#allocation3 + $0x8] sm:$0xff]   ;;  %v2074_v13 = vld [vmem:[#allocation3 + $0x10] sm:$0xff]   ;;  %s2207_s1 = smov [#allocation8]  }
  0x2b   :  { %663 = vmatpush1.bf16.msra.mxu0 %v2066_v2  ;;  %2050 = vmatpush1.bf16.msra.mxu1 %v2066_v2  ;;  %v2013_v6 = vcombine.high %v372_v4, %v372_v4  ;;  %v2012_v7 = vcombine.low %v372_v4, %v372_v4  ;;  %v2072_v9 = vld [vmem:[#allocation3] sm:$0xff]   ;;  %v2082_v12 = vld [vmem:[#allocation3 + $0x88] sm:$0xff]   ;;  %v2084_v14 = vld [vmem:[#allocation3 + $0x90] sm:$0xff]   ;;  %s1949_s12 = sshll.u32 %s2207_s1, 4  ;;  %s2507_s12 = int_to_ptr.vmem [resolvable:$true] %s1949_s12 }
  0x2c   :  { %664 = vmatprep.subr.bf16.mxu0 %v2067_v3  ;;  %2048 = vmatprep.subr.bf16.mxu1 %v2067_v3  ;;  %v2080_v10 = vld [vmem:[#allocation3 + $0x80] sm:$0xff]   ;;  %v2075_v15 = vld [vmem:[#allocation3 + $0x18] sm:$0xff]   ;;  %v2077_v19 = vld [vmem:[#allocation3 + $0x28] sm:$0xff]   ;;  %s2148_s13 = scalar_lea.vmem %s2507_s12, 16384  ;;  %p2153_p3 = scmp.lt.s32.totalorder %s2507_s12, %s2507_s12 }
  0x2d   :  { %v657_v8 = vsel %vm655_vm0, %v2012_v7, 0  ;;  %v2086_v16 = vld [vmem:[#allocation3 + $0x98] sm:$0xff]   ;;  %v2076_v17 = vld [vmem:[#allocation3 + $0x20] sm:$0xff]   ;;  %v2090_v20 = vld [vmem:[#allocation3 + $0xa8] sm:$0xff]   ;;  %p2149_p2 = scmp.ne.s32.totalorder %s2507_s12, %s2148_s13  ;;  %p2154_p4 = scmp.lt.s32.totalorder %s2148_s13, %s2148_s13 }
  0x2e   :  { %v2088_v18 = vld [vmem:[#allocation3 + $0xa0] sm:$0xff]   ;;  %v2078_v21 = vld [vmem:[#allocation3 + $0x30] sm:$0xff]   ;;  %v2079_v23 = vld [vmem:[#allocation3 + $0x38] sm:$0xff]  }
  0x2f   :  { %665 = vmatpush1.bf16.msra.mxu0 %v2069_v5  ;;  %2051 = vmatpush1.bf16.msra.mxu1 %v2069_v5  ;;  %v2092_v22 = vld [vmem:[#allocation3 + $0xb0] sm:$0xff]   ;;  %v2094_v24 = vld [vmem:[#allocation3 + $0xb8] sm:$0xff]   ;;  %v2081_v25 = vld [vmem:[#allocation3 + $0x40] sm:$0xff]   ;;  %p2155_p5 = por %p2154_p4, %p2153_p3 }
  0x30   :  { %2014 = vmatprep.subr.msk.bf16.mxu0 %vm655_vm0, %v2013_v6  ;;  %2049 = vmatprep.subr.msk.bf16.mxu1 %vm655_vm0, %v2013_v6  ;;  %v2096_v26 = vld [vmem:[#allocation3 + $0xc0] sm:$0xff]   ;;  %v2083_v27 = vld [vmem:[#allocation3 + $0x48] sm:$0xff]   ;;  %v2085_v29 = vld [vmem:[#allocation3 + $0x50] sm:$0xff]  }
  0x31   :  { %v2097_v28 = vld [vmem:[#allocation3 + $0xc8] sm:$0xff]   ;;  %v2098_v30 = vld [vmem:[#allocation3 + $0xd0] sm:$0xff]   ;;  %v2087_v31 = vld [vmem:[#allocation3 + $0x58] sm:$0xff]   ;;  %p2156_p6 = pnand %p2155_p5, %p2149_p2 }
  0x32   :  { %v2099_v32 = vld [vmem:[#allocation3 + $0xd8] sm:$0xff]   ;;  %v2089_v33 = vld [vmem:[#allocation3 + $0x60] sm:$0xff]   ;;  %v2091_v35 = vld [vmem:[#allocation3 + $0x68] sm:$0xff]  }
  0x33   :  { %667 = vmatpush1.bf16.msra.mxu0 %v657_v8  ;;  %2052 = vmatpush1.bf16.msra.mxu1 %v657_v8  ;;  %v2100_v34 = vld [vmem:[#allocation3 + $0xe0] sm:$0xff]   ;;  %v2101_v36 = vld [vmem:[#allocation3 + $0xe8] sm:$0xff]   ;;  %v2093_v37 = vld [vmem:[#allocation3 + $0x70] sm:$0xff]  }
  0x34   :  { %v2102_v38 = vld [vmem:[#allocation3 + $0xf0] sm:$0xff]   ;;  %v2095_v39 = vld [vmem:[#allocation3 + $0x78] sm:$0xff]  }
  0x35   :  { %v2103_v40 = vld [vmem:[#allocation3 + $0xf8] sm:$0xff]  }
  0x36   :  { %2015 = vmatmul.mubr.msk.bf16.vlgmr.msra.gmra.mrb[0].mxu0 %vm558_vm1, %v2072_v9  ;;  %2031 = vmatmul.mubr.msk.bf16.vlgmr.msra.gmra.mrb[0].mxu1 %vm558_vm1, %v2080_v10 }
  0x37   :  { %704 = vmatprep.mubr.bf16.mxu0 %v2206_v0  ;;  %864 = vmatprep.mubr.bf16.mxu1 %v2206_v0 }
  0x3e   :  { %2016 = vmatmul.mubr.msk.bf16.gmra.mrb[4].mxu0 %vm558_vm1, %v2073_v11  ;;  %2032 = vmatmul.mubr.msk.bf16.gmra.mrb[4].mxu1 %vm558_vm1, %v2082_v12 }
  0x3f   :  { %714 = vmatprep.mubr.bf16.mxu0 %v2206_v0  ;;  %874 = vmatprep.mubr.bf16.mxu1 %v2206_v0 }
  0x46   :  { %2017 = vmatmul.mubr.msk.bf16.gmra.mrb[8].mxu0 %vm558_vm1, %v2074_v13  ;;  %2033 = vmatmul.mubr.msk.bf16.gmra.mrb[8].mxu1 %vm558_vm1, %v2084_v14 }
  0x47   :  { %724 = vmatprep.mubr.bf16.mxu0 %v2206_v0  ;;  %884 = vmatprep.mubr.bf16.mxu1 %v2206_v0 }
  0x4e   :  { %2018 = vmatmul.mubr.msk.bf16.gmra.mrb[12].mxu0 %vm558_vm1, %v2075_v15  ;;  %2034 = vmatmul.mubr.msk.bf16.gmra.mrb[12].mxu1 %vm558_vm1, %v2086_v16 }
  0x4f   :  { %734 = vmatprep.mubr.bf16.mxu0 %v2206_v0  ;;  %894 = vmatprep.mubr.bf16.mxu1 %v2206_v0 }
  0x56   :  { %2019 = vmatmul.mubr.msk.bf16.gmra.mrb[16].mxu0 %vm558_vm1, %v2076_v17  ;;  %2035 = vmatmul.mubr.msk.bf16.gmra.mrb[16].mxu1 %vm558_vm1, %v2088_v18 }
  0x57   :  { %744 = vmatprep.mubr.bf16.mxu0 %v2206_v0  ;;  %904 = vmatprep.mubr.bf16.mxu1 %v2206_v0 }
  0x5e   :  { %2020 = vmatmul.mubr.msk.bf16.gmra.mrb[20].mxu0 %vm558_vm1, %v2077_v19  ;;  %2036 = vmatmul.mubr.msk.bf16.gmra.mrb[20].mxu1 %vm558_vm1, %v2090_v20 }
  0x5f   :  { %754 = vmatprep.mubr.bf16.mxu0 %v2206_v0  ;;  %914 = vmatprep.mubr.bf16.mxu1 %v2206_v0 }
  0x66   :  { %2021 = vmatmul.mubr.msk.bf16.gmra.mrb[24].mxu0 %vm558_vm1, %v2078_v21  ;;  %2037 = vmatmul.mubr.msk.bf16.gmra.mrb[24].mxu1 %vm558_vm1, %v2092_v22 }
  0x67   :  { %764 = vmatprep.mubr.bf16.mxu0 %v2206_v0  ;;  %924 = vmatprep.mubr.bf16.mxu1 %v2206_v0 }
  0x6e   :  { %2022 = vmatmul.mubr.msk.bf16.gmra.mrb[28].mxu0 %vm558_vm1, %v2079_v23  ;;  %2038 = vmatmul.mubr.msk.bf16.gmra.mrb[28].mxu1 %vm558_vm1, %v2094_v24 }
  0x6f   :  { %774 = vmatprep.mubr.bf16.mxu0 %v2206_v0  ;;  %934 = vmatprep.mubr.bf16.mxu1 %v2206_v0 }
  0x76   :  { %2023 = vmatmul.mubr.msk.bf16.gmra.mrb[32].mxu0 %vm558_vm1, %v2081_v25  ;;  %2039 = vmatmul.mubr.msk.bf16.gmra.mrb[32].mxu1 %vm558_vm1, %v2096_v26 }
  0x77   :  { %784 = vmatprep.mubr.bf16.mxu0 %v2206_v0  ;;  %944 = vmatprep.mubr.bf16.mxu1 %v2206_v0 }
  0x7e   :  { %2024 = vmatmul.mubr.msk.bf16.gmra.mrb[36].mxu0 %vm558_vm1, %v2083_v27  ;;  %2040 = vmatmul.mubr.msk.bf16.gmra.mrb[36].mxu1 %vm558_vm1, %v2097_v28 }
  0x7f   :  { %794 = vmatprep.mubr.bf16.mxu0 %v2206_v0  ;;  %954 = vmatprep.mubr.bf16.mxu1 %v2206_v0 }
  0x86   :  { %2025 = vmatmul.mubr.msk.bf16.gmra.mrb[40].mxu0 %vm558_vm1, %v2085_v29  ;;  %2041 = vmatmul.mubr.msk.bf16.gmra.mrb[40].mxu1 %vm558_vm1, %v2098_v30 }
  0x87   :  { %804 = vmatprep.mubr.bf16.mxu0 %v2206_v0  ;;  %964 = vmatprep.mubr.bf16.mxu1 %v2206_v0 }
  0x8e   :  { %2026 = vmatmul.mubr.msk.bf16.gmra.mrb[44].mxu0 %vm558_vm1, %v2087_v31  ;;  %2042 = vmatmul.mubr.msk.bf16.gmra.mrb[44].mxu1 %vm558_vm1, %v2099_v32 }
  0x8f   :  { %814 = vmatprep.mubr.bf16.mxu0 %v2206_v0  ;;  %974 = vmatprep.mubr.bf16.mxu1 %v2206_v0 }
  0x96   :  { %2027 = vmatmul.mubr.msk.bf16.gmra.mrb[48].mxu0 %vm558_vm1, %v2089_v33  ;;  %2043 = vmatmul.mubr.msk.bf16.gmra.mrb[48].mxu1 %vm558_vm1, %v2100_v34 }
  0x97   :  { %824 = vmatprep.mubr.bf16.mxu0 %v2206_v0  ;;  %984 = vmatprep.mubr.bf16.mxu1 %v2206_v0 }
  0x9e   :  { %2028 = vmatmul.mubr.msk.bf16.gmra.mrb[52].mxu0 %vm558_vm1, %v2091_v35  ;;  %2044 = vmatmul.mubr.msk.bf16.gmra.mrb[52].mxu1 %vm558_vm1, %v2101_v36 }
  0x9f   :  { %834 = vmatprep.mubr.bf16.mxu0 %v2206_v0  ;;  %994 = vmatprep.mubr.bf16.mxu1 %v2206_v0 }
  0xa6   :  { %2029 = vmatmul.mubr.msk.bf16.gmra.mrb[56].mxu0 %vm558_vm1, %v2093_v37  ;;  %2045 = vmatmul.mubr.msk.bf16.gmra.mrb[56].mxu1 %vm558_vm1, %v2102_v38 }
  0xa7   :  { %844 = vmatprep.mubr.bf16.mxu0 %v2206_v0  ;;  %1004 = vmatprep.mubr.bf16.mxu1 %v2206_v0 }
  0xae   :  { %2030 = vmatmul.mubr.msk.bf16.gmra.mrb[60].mxu0 %vm558_vm1, %v2095_v39  ;;  %2046 = vmatmul.mubr.msk.bf16.gmra.mrb[60].mxu1 %vm558_vm1, %v2103_v40 }
 0x109   :  { %v696_v41 = vpop.f32.mrb[0].mxu0  ;;  %v2319_v42 = vpop.f32.mrb[0].mxu1 }
 0x10a   :  { %1402 = vst [vmem:[#allocation8] sm:$0xff] %v696_v41  ;;  %v698_v43 = vpop.f32.mrb[1].mxu0  ;;  %1466 = vst [vmem:[#allocation8 + $0x200] sm:$0xff] %v2319_v42  ;;  %v2322_v44 = vpop.f32.mrb[1].mxu1  ;;  %v1668_v47 = vmul.f32 %v696_v41, %v696_v41 }
 0x10b   :  { %1403 = vst [vmem:[#allocation8 + $0x8] sm:$0xff] %v698_v43  ;;  %v700_v45 = vpop.f32.mrb[2].mxu0  ;;  %1467 = vst [vmem:[#allocation8 + $0x208] sm:$0xff] %v2322_v44  ;;  %v2325_v46 = vpop.f32.mrb[2].mxu1  ;;  %v1669_v52 = vmul.f32 %v698_v43, %v698_v43 }
 0x10c   :  { %1404 = vst [vmem:[#allocation8 + $0x10] sm:$0xff] %v700_v45  ;;  %v1530_v48 = vadd.f32 %v700_v45, %v696_v41  ;;  %v1670_v49 = vmul.f32 %v700_v45, %v700_v45  ;;  %v702_v50 = vpop.f32.mrb[3].mxu0  ;;  %1468 = vst [vmem:[#allocation8 + $0x210] sm:$0xff] %v2325_v46  ;;  %v2328_v51 = vpop.f32.mrb[3].mxu1 }
 0x10d   :  { %1405 = vst [vmem:[#allocation8 + $0x18] sm:$0xff] %v702_v50  ;;  %v1599_v53 = vadd.f32 %v702_v50, %v698_v43  ;;  %v1671_v54 = vmul.f32 %v702_v50, %v702_v50  ;;  %1469 = vst [vmem:[#allocation8 + $0x218] sm:$0xff] %v2328_v51 }
 0x10e   :  { %v1796_v55 = vadd.f32 %v1670_v49, %v1668_v47 }
 0x10f   :  { %v1865_v56 = vadd.f32 %v1671_v54, %v1669_v52 }
 0x111   :  { %v706_v57 = vpop.f32.mrb[4].mxu0  ;;  %v2331_v58 = vpop.f32.mrb[4].mxu1 }
 0x112   :  { %1406 = vst [vmem:[#allocation8 + $0x20] sm:$0xff] %v706_v57  ;;  %v1531_v59 = vadd.f32 %v1530_v48, %v706_v57  ;;  %v1672_v60 = vmul.f32 %v706_v57, %v706_v57  ;;  %v708_v61 = vpop.f32.mrb[5].mxu0  ;;  %1470 = vst [vmem:[#allocation8 + $0x220] sm:$0xff] %v2331_v58  ;;  %v2334_v62 = vpop.f32.mrb[5].mxu1 }
 0x113   :  { %1407 = vst [vmem:[#allocation8 + $0x28] sm:$0xff] %v708_v61  ;;  %v1600_v63 = vadd.f32 %v1599_v53, %v708_v61  ;;  %v1673_v0 = vmul.f32 %v708_v61, %v708_v61  ;;  %v710_v1 = vpop.f32.mrb[6].mxu0  ;;  %1471 = vst [vmem:[#allocation8 + $0x228] sm:$0xff] %v2334_v62  ;;  %v2337_v2 = vpop.f32.mrb[6].mxu1 }
 0x114   :  { %v1797_v3 = vadd.f32 %v1796_v55, %v1672_v60  ;;  %1408 = vst [vmem:[#allocation8 + $0x30] sm:$0xff] %v710_v1  ;;  %v1532_v4 = vadd.f32 %v1531_v59, %v710_v1  ;;  %v1674_v5 = vmul.f32 %v710_v1, %v710_v1  ;;  %v712_v6 = vpop.f32.mrb[7].mxu0  ;;  %1472 = vst [vmem:[#allocation8 + $0x230] sm:$0xff] %v2337_v2  ;;  %v2340_v7 = vpop.f32.mrb[7].mxu1 }
 0x115   :  { %v1866_v8 = vadd.f32 %v1865_v56, %v1673_v0  ;;  %1409 = vst [vmem:[#allocation8 + $0x38] sm:$0xff] %v712_v6  ;;  %v1601_v9 = vadd.f32 %v1600_v63, %v712_v6  ;;  %v1675_v10 = vmul.f32 %v712_v6, %v712_v6  ;;  %1473 = vst [vmem:[#allocation8 + $0x238] sm:$0xff] %v2340_v7 }
 0x116   :  { %v1798_v11 = vadd.f32 %v1797_v3, %v1674_v5 }
 0x117   :  { %v1867_v12 = vadd.f32 %v1866_v8, %v1675_v10 }
 0x119   :  { %v716_v13 = vpop.f32.mrb[8].mxu0  ;;  %v2343_v14 = vpop.f32.mrb[8].mxu1 }
 0x11a   :  { %1410 = vst [vmem:[#allocation8 + $0x40] sm:$0xff] %v716_v13  ;;  %v1533_v15 = vadd.f32 %v1532_v4, %v716_v13  ;;  %v1676_v16 = vmul.f32 %v716_v13, %v716_v13  ;;  %v718_v17 = vpop.f32.mrb[9].mxu0  ;;  %1474 = vst [vmem:[#allocation8 + $0x240] sm:$0xff] %v2343_v14  ;;  %v2346_v18 = vpop.f32.mrb[9].mxu1 }
 0x11b   :  { %1411 = vst [vmem:[#allocation8 + $0x48] sm:$0xff] %v718_v17  ;;  %v1602_v19 = vadd.f32 %v1601_v9, %v718_v17  ;;  %v1677_v20 = vmul.f32 %v718_v17, %v718_v17  ;;  %v720_v21 = vpop.f32.mrb[10].mxu0  ;;  %1475 = vst [vmem:[#allocation8 + $0x248] sm:$0xff] %v2346_v18  ;;  %v2349_v22 = vpop.f32.mrb[10].mxu1 }
 0x11c   :  { %v1799_v23 = vadd.f32 %v1798_v11, %v1676_v16  ;;  %1412 = vst [vmem:[#allocation8 + $0x50] sm:$0xff] %v720_v21  ;;  %v1534_v24 = vadd.f32 %v1533_v15, %v720_v21  ;;  %v1678_v25 = vmul.f32 %v720_v21, %v720_v21  ;;  %v722_v26 = vpop.f32.mrb[11].mxu0  ;;  %1476 = vst [vmem:[#allocation8 + $0x250] sm:$0xff] %v2349_v22  ;;  %v2352_v27 = vpop.f32.mrb[11].mxu1 }
 0x11d   :  { %v1868_v28 = vadd.f32 %v1867_v12, %v1677_v20  ;;  %1413 = vst [vmem:[#allocation8 + $0x58] sm:$0xff] %v722_v26  ;;  %v1603_v29 = vadd.f32 %v1602_v19, %v722_v26  ;;  %v1679_v30 = vmul.f32 %v722_v26, %v722_v26  ;;  %1477 = vst [vmem:[#allocation8 + $0x258] sm:$0xff] %v2352_v27 }
 0x11e   :  { %v1800_v31 = vadd.f32 %v1799_v23, %v1678_v25 }
 0x11f   :  { %v1869_v32 = vadd.f32 %v1868_v28, %v1679_v30 }
 0x121   :  { %v726_v33 = vpop.f32.mrb[12].mxu0  ;;  %v2355_v34 = vpop.f32.mrb[12].mxu1 }
 0x122   :  { %1414 = vst [vmem:[#allocation8 + $0x60] sm:$0xff] %v726_v33  ;;  %v1535_v35 = vadd.f32 %v1534_v24, %v726_v33  ;;  %v1680_v36 = vmul.f32 %v726_v33, %v726_v33  ;;  %v728_v37 = vpop.f32.mrb[13].mxu0  ;;  %1478 = vst [vmem:[#allocation8 + $0x260] sm:$0xff] %v2355_v34  ;;  %v2358_v38 = vpop.f32.mrb[13].mxu1 }
 0x123   :  { %1415 = vst [vmem:[#allocation8 + $0x68] sm:$0xff] %v728_v37  ;;  %v1604_v39 = vadd.f32 %v1603_v29, %v728_v37  ;;  %v1681_v40 = vmul.f32 %v728_v37, %v728_v37  ;;  %v730_v41 = vpop.f32.mrb[14].mxu0  ;;  %1479 = vst [vmem:[#allocation8 + $0x268] sm:$0xff] %v2358_v38  ;;  %v2361_v43 = vpop.f32.mrb[14].mxu1 }
 0x124   :  { %v1801_v45 = vadd.f32 %v1800_v31, %v1680_v36  ;;  %1416 = vst [vmem:[#allocation8 + $0x70] sm:$0xff] %v730_v41  ;;  %v1536_v47 = vadd.f32 %v1535_v35, %v730_v41  ;;  %v1682_v48 = vmul.f32 %v730_v41, %v730_v41  ;;  %v732_v49 = vpop.f32.mrb[15].mxu0  ;;  %1480 = vst [vmem:[#allocation8 + $0x270] sm:$0xff] %v2361_v43  ;;  %v2364_v50 = vpop.f32.mrb[15].mxu1 }
 0x125   :  { %v1870_v52 = vadd.f32 %v1869_v32, %v1681_v40  ;;  %1417 = vst [vmem:[#allocation8 + $0x78] sm:$0xff] %v732_v49  ;;  %v1605_v53 = vadd.f32 %v1604_v39, %v732_v49  ;;  %v1683_v54 = vmul.f32 %v732_v49, %v732_v49  ;;  %1481 = vst [vmem:[#allocation8 + $0x278] sm:$0xff] %v2364_v50 }
 0x126   :  { %v1802_v55 = vadd.f32 %v1801_v45, %v1682_v48 }
 0x127   :  { %v1871_v56 = vadd.f32 %v1870_v52, %v1683_v54 }
 0x129   :  { %v736_v57 = vpop.f32.mrb[16].mxu0  ;;  %v2367_v59 = vpop.f32.mrb[16].mxu1 }
 0x12a   :  { %1418 = vst [vmem:[#allocation8 + $0x80] sm:$0xff] %v736_v57  ;;  %v1537_v60 = vadd.f32 %v1536_v47, %v736_v57  ;;  %v1684_v61 = vmul.f32 %v736_v57, %v736_v57  ;;  %v738_v63 = vpop.f32.mrb[17].mxu0  ;;  %1482 = vst [vmem:[#allocation8 + $0x280] sm:$0xff] %v2367_v59  ;;  %v2370_v0 = vpop.f32.mrb[17].mxu1 }
 0x12b   :  { %1419 = vst [vmem:[#allocation8 + $0x88] sm:$0xff] %v738_v63  ;;  %v1606_v1 = vadd.f32 %v1605_v53, %v738_v63  ;;  %v1685_v3 = vmul.f32 %v738_v63, %v738_v63  ;;  %v740_v4 = vpop.f32.mrb[18].mxu0  ;;  %1483 = vst [vmem:[#allocation8 + $0x288] sm:$0xff] %v2370_v0  ;;  %v2373_v5 = vpop.f32.mrb[18].mxu1 }
 0x12c   :  { %v1803_v6 = vadd.f32 %v1802_v55, %v1684_v61  ;;  %1420 = vst [vmem:[#allocation8 + $0x90] sm:$0xff] %v740_v4  ;;  %v1538_v8 = vadd.f32 %v1537_v60, %v740_v4  ;;  %v1686_v9 = vmul.f32 %v740_v4, %v740_v4  ;;  %v742_v10 = vpop.f32.mrb[19].mxu0  ;;  %1484 = vst [vmem:[#allocation8 + $0x290] sm:$0xff] %v2373_v5  ;;  %v2376_v11 = vpop.f32.mrb[19].mxu1 }
 0x12d   :  { %v1872_v12 = vadd.f32 %v1871_v56, %v1685_v3  ;;  %1421 = vst [vmem:[#allocation8 + $0x98] sm:$0xff] %v742_v10  ;;  %v1607_v13 = vadd.f32 %v1606_v1, %v742_v10  ;;  %v1687_v15 = vmul.f32 %v742_v10, %v742_v10  ;;  %1485 = vst [vmem:[#allocation8 + $0x298] sm:$0xff] %v2376_v11 }
 0x12e   :  { %v1804_v16 = vadd.f32 %v1803_v6, %v1686_v9 }
 0x12f   :  { %v1873_v17 = vadd.f32 %v1872_v12, %v1687_v15 }
 0x131   :  { %v746_v19 = vpop.f32.mrb[20].mxu0  ;;  %v2379_v20 = vpop.f32.mrb[20].mxu1 }
 0x132   :  { %1422 = vst [vmem:[#allocation8 + $0xa0] sm:$0xff] %v746_v19  ;;  %v1539_v21 = vadd.f32 %v1538_v8, %v746_v19  ;;  %v1688_v23 = vmul.f32 %v746_v19, %v746_v19  ;;  %v748_v24 = vpop.f32.mrb[21].mxu0  ;;  %1486 = vst [vmem:[#allocation8 + $0x2a0] sm:$0xff] %v2379_v20  ;;  %v2382_v25 = vpop.f32.mrb[21].mxu1 }
 0x133   :  { %1423 = vst [vmem:[#allocation8 + $0xa8] sm:$0xff] %v748_v24  ;;  %v1608_v26 = vadd.f32 %v1607_v13, %v748_v24  ;;  %v1689_v28 = vmul.f32 %v748_v24, %v748_v24  ;;  %v750_v29 = vpop.f32.mrb[22].mxu0  ;;  %1487 = vst [vmem:[#allocation8 + $0x2a8] sm:$0xff] %v2382_v25  ;;  %v2385_v30 = vpop.f32.mrb[22].mxu1 }
 0x134   :  { %v1805_v31 = vadd.f32 %v1804_v16, %v1688_v23  ;;  %1424 = vst [vmem:[#allocation8 + $0xb0] sm:$0xff] %v750_v29  ;;  %v1540_v32 = vadd.f32 %v1539_v21, %v750_v29  ;;  %v1690_v33 = vmul.f32 %v750_v29, %v750_v29  ;;  %v752_v35 = vpop.f32.mrb[23].mxu0  ;;  %1488 = vst [vmem:[#allocation8 + $0x2b0] sm:$0xff] %v2385_v30  ;;  %v2388_v36 = vpop.f32.mrb[23].mxu1 }
 0x135   :  { %v1874_v37 = vadd.f32 %v1873_v17, %v1689_v28  ;;  %1425 = vst [vmem:[#allocation8 + $0xb8] sm:$0xff] %v752_v35  ;;  %v1609_v39 = vadd.f32 %v1608_v26, %v752_v35  ;;  %v1691_v40 = vmul.f32 %v752_v35, %v752_v35  ;;  %1489 = vst [vmem:[#allocation8 + $0x2b8] sm:$0xff] %v2388_v36 }
 0x136   :  { %v1806_v41 = vadd.f32 %v1805_v31, %v1690_v33 }
 0x137   :  { %v1875_v45 = vadd.f32 %v1874_v37, %v1691_v40 }
 0x139   :  { %v756_v47 = vpop.f32.mrb[24].mxu0  ;;  %v2391_v48 = vpop.f32.mrb[24].mxu1 }
 0x13a   :  { %1426 = vst [vmem:[#allocation8 + $0xc0] sm:$0xff] %v756_v47  ;;  %v1541_v49 = vadd.f32 %v1540_v32, %v756_v47  ;;  %v1692_v52 = vmul.f32 %v756_v47, %v756_v47  ;;  %v758_v53 = vpop.f32.mrb[25].mxu0  ;;  %1490 = vst [vmem:[#allocation8 + $0x2c0] sm:$0xff] %v2391_v48  ;;  %v2394_v54 = vpop.f32.mrb[25].mxu1 }
 0x13b   :  { %1427 = vst [vmem:[#allocation8 + $0xc8] sm:$0xff] %v758_v53  ;;  %v1610_v55 = vadd.f32 %v1609_v39, %v758_v53  ;;  %v1693_v56 = vmul.f32 %v758_v53, %v758_v53  ;;  %v760_v57 = vpop.f32.mrb[26].mxu0  ;;  %1491 = vst [vmem:[#allocation8 + $0x2c8] sm:$0xff] %v2394_v54  ;;  %v2397_v60 = vpop.f32.mrb[26].mxu1 }
 0x13c   :  { %v1807_v61 = vadd.f32 %v1806_v41, %v1692_v52  ;;  %1428 = vst [vmem:[#allocation8 + $0xd0] sm:$0xff] %v760_v57  ;;  %v1542_v63 = vadd.f32 %v1541_v49, %v760_v57  ;;  %v1694_v1 = vmul.f32 %v760_v57, %v760_v57  ;;  %v762_v3 = vpop.f32.mrb[27].mxu0  ;;  %1492 = vst [vmem:[#allocation8 + $0x2d0] sm:$0xff] %v2397_v60  ;;  %v2400_v4 = vpop.f32.mrb[27].mxu1 }
 0x13d   :  { %v1876_v6 = vadd.f32 %v1875_v45, %v1693_v56  ;;  %1429 = vst [vmem:[#allocation8 + $0xd8] sm:$0xff] %v762_v3  ;;  %v1611_v8 = vadd.f32 %v1610_v55, %v762_v3  ;;  %v1695_v9 = vmul.f32 %v762_v3, %v762_v3  ;;  %1493 = vst [vmem:[#allocation8 + $0x2d8] sm:$0xff] %v2400_v4 }
 0x13e   :  { %v1808_v10 = vadd.f32 %v1807_v61, %v1694_v1 }
 0x13f   :  { %v1877_v12 = vadd.f32 %v1876_v6, %v1695_v9 }
 0x141   :  { %v766_v13 = vpop.f32.mrb[28].mxu0  ;;  %v2403_v15 = vpop.f32.mrb[28].mxu1 }
 0x142   :  { %1430 = vst [vmem:[#allocation8 + $0xe0] sm:$0xff] %v766_v13  ;;  %v1543_v16 = vadd.f32 %v1542_v63, %v766_v13  ;;  %v1696_v17 = vmul.f32 %v766_v13, %v766_v13  ;;  %v768_v19 = vpop.f32.mrb[29].mxu0  ;;  %1494 = vst [vmem:[#allocation8 + $0x2e0] sm:$0xff] %v2403_v15  ;;  %v2406_v21 = vpop.f32.mrb[29].mxu1 }
 0x143   :  { %1431 = vst [vmem:[#allocation8 + $0xe8] sm:$0xff] %v768_v19  ;;  %v1612_v23 = vadd.f32 %v1611_v8, %v768_v19  ;;  %v1697_v24 = vmul.f32 %v768_v19, %v768_v19  ;;  %v770_v26 = vpop.f32.mrb[30].mxu0  ;;  %1495 = vst [vmem:[#allocation8 + $0x2e8] sm:$0xff] %v2406_v21  ;;  %v2409_v28 = vpop.f32.mrb[30].mxu1 }
 0x144   :  { %v1809_v29 = vadd.f32 %v1808_v10, %v1696_v17  ;;  %1432 = vst [vmem:[#allocation8 + $0xf0] sm:$0xff] %v770_v26  ;;  %v1544_v31 = vadd.f32 %v1543_v16, %v770_v26  ;;  %v1698_v32 = vmul.f32 %v770_v26, %v770_v26  ;;  %v772_v33 = vpop.f32.mrb[31].mxu0  ;;  %1496 = vst [vmem:[#allocation8 + $0x2f0] sm:$0xff] %v2409_v28  ;;  %v2412_v35 = vpop.f32.mrb[31].mxu1 }
 0x145   :  { %v1878_v37 = vadd.f32 %v1877_v12, %v1697_v24  ;;  %1433 = vst [vmem:[#allocation8 + $0xf8] sm:$0xff] %v772_v33  ;;  %v1613_v39 = vadd.f32 %v1612_v23, %v772_v33  ;;  %v1699_v40 = vmul.f32 %v772_v33, %v772_v33  ;;  %1497 = vst [vmem:[#allocation8 + $0x2f8] sm:$0xff] %v2412_v35 }
 0x146   :  { %v1810_v41 = vadd.f32 %v1809_v29, %v1698_v32 }
 0x147   :  { %v1879_v45 = vadd.f32 %v1878_v37, %v1699_v40 }
 0x149   :  { %v776_v47 = vpop.f32.mrb[32].mxu0  ;;  %v2415_v49 = vpop.f32.mrb[32].mxu1 }
 0x14a   :  { %1434 = vst [vmem:[#allocation8 + $0x100] sm:$0xff] %v776_v47  ;;  %v1545_v52 = vadd.f32 %v1544_v31, %v776_v47  ;;  %v1700_v53 = vmul.f32 %v776_v47, %v776_v47  ;;  %v778_v55 = vpop.f32.mrb[33].mxu0  ;;  %1498 = vst [vmem:[#allocation8 + $0x300] sm:$0xff] %v2415_v49  ;;  %v2418_v56 = vpop.f32.mrb[33].mxu1 }
 0x14b   :  { %1435 = vst [vmem:[#allocation8 + $0x108] sm:$0xff] %v778_v55  ;;  %v1614_v57 = vadd.f32 %v1613_v39, %v778_v55  ;;  %v1701_v61 = vmul.f32 %v778_v55, %v778_v55  ;;  %v780_v63 = vpop.f32.mrb[34].mxu0  ;;  %1499 = vst [vmem:[#allocation8 + $0x308] sm:$0xff] %v2418_v56  ;;  %v2421_v1 = vpop.f32.mrb[34].mxu1 }
 0x14c   :  { %v1811_v3 = vadd.f32 %v1810_v41, %v1700_v53  ;;  %1436 = vst [vmem:[#allocation8 + $0x110] sm:$0xff] %v780_v63  ;;  %v1546_v6 = vadd.f32 %v1545_v52, %v780_v63  ;;  %v1702_v8 = vmul.f32 %v780_v63, %v780_v63  ;;  %v782_v9 = vpop.f32.mrb[35].mxu0  ;;  %1500 = vst [vmem:[#allocation8 + $0x310] sm:$0xff] %v2421_v1  ;;  %v2424_v10 = vpop.f32.mrb[35].mxu1 }
 0x14d   :  { %v1880_v12 = vadd.f32 %v1879_v45, %v1701_v61  ;;  %1437 = vst [vmem:[#allocation8 + $0x118] sm:$0xff] %v782_v9  ;;  %v1615_v13 = vadd.f32 %v1614_v57, %v782_v9  ;;  %v1703_v16 = vmul.f32 %v782_v9, %v782_v9  ;;  %1501 = vst [vmem:[#allocation8 + $0x318] sm:$0xff] %v2424_v10 }
 0x14e   :  { %v1812_v17 = vadd.f32 %v1811_v3, %v1702_v8 }
 0x14f   :  { %v1881_v19 = vadd.f32 %v1880_v12, %v1703_v16 }
 0x151   :  { %v786_v23 = vpop.f32.mrb[36].mxu0  ;;  %v2427_v24 = vpop.f32.mrb[36].mxu1 }
 0x152   :  { %1438 = vst [vmem:[#allocation8 + $0x120] sm:$0xff] %v786_v23  ;;  %v1547_v26 = vadd.f32 %v1546_v6, %v786_v23  ;;  %v1704_v29 = vmul.f32 %v786_v23, %v786_v23  ;;  %v788_v31 = vpop.f32.mrb[37].mxu0  ;;  %1502 = vst [vmem:[#allocation8 + $0x320] sm:$0xff] %v2427_v24  ;;  %v2430_v32 = vpop.f32.mrb[37].mxu1 }
 0x153   :  { %1439 = vst [vmem:[#allocation8 + $0x128] sm:$0xff] %v788_v31  ;;  %v1616_v33 = vadd.f32 %v1615_v13, %v788_v31  ;;  %v1705_v37 = vmul.f32 %v788_v31, %v788_v31  ;;  %v790_v39 = vpop.f32.mrb[38].mxu0  ;;  %1503 = vst [vmem:[#allocation8 + $0x328] sm:$0xff] %v2430_v32  ;;  %v2433_v40 = vpop.f32.mrb[38].mxu1 }
 0x154   :  { %v1813_v41 = vadd.f32 %v1812_v17, %v1704_v29  ;;  %1440 = vst [vmem:[#allocation8 + $0x130] sm:$0xff] %v790_v39  ;;  %v1548_v45 = vadd.f32 %v1547_v26, %v790_v39  ;;  %v1706_v47 = vmul.f32 %v790_v39, %v790_v39  ;;  %v792_v52 = vpop.f32.mrb[39].mxu0  ;;  %1504 = vst [vmem:[#allocation8 + $0x330] sm:$0xff] %v2433_v40  ;;  %v2436_v53 = vpop.f32.mrb[39].mxu1 }
 0x155   :  { %v1882_v55 = vadd.f32 %v1881_v19, %v1705_v37  ;;  %1441 = vst [vmem:[#allocation8 + $0x138] sm:$0xff] %v792_v52  ;;  %v1617_v57 = vadd.f32 %v1616_v33, %v792_v52  ;;  %v1707_v61 = vmul.f32 %v792_v52, %v792_v52  ;;  %1505 = vst [vmem:[#allocation8 + $0x338] sm:$0xff] %v2436_v53 }
 0x156   :  { %v1814_v63 = vadd.f32 %v1813_v41, %v1706_v47 }
 0x157   :  { %v1883_v3 = vadd.f32 %v1882_v55, %v1707_v61 }
 0x159   :  { %v796_v6 = vpop.f32.mrb[40].mxu0  ;;  %v2439_v8 = vpop.f32.mrb[40].mxu1 }
 0x15a   :  { %1442 = vst [vmem:[#allocation8 + $0x140] sm:$0xff] %v796_v6  ;;  %v1549_v9 = vadd.f32 %v1548_v45, %v796_v6  ;;  %v1708_v12 = vmul.f32 %v796_v6, %v796_v6  ;;  %v798_v13 = vpop.f32.mrb[41].mxu0  ;;  %1506 = vst [vmem:[#allocation8 + $0x340] sm:$0xff] %v2439_v8  ;;  %v2442_v16 = vpop.f32.mrb[41].mxu1 }
 0x15b   :  { %1443 = vst [vmem:[#allocation8 + $0x148] sm:$0xff] %v798_v13  ;;  %v1618_v17 = vadd.f32 %v1617_v57, %v798_v13  ;;  %v1709_v19 = vmul.f32 %v798_v13, %v798_v13  ;;  %v800_v23 = vpop.f32.mrb[42].mxu0  ;;  %1507 = vst [vmem:[#allocation8 + $0x348] sm:$0xff] %v2442_v16  ;;  %v2445_v26 = vpop.f32.mrb[42].mxu1 }
 0x15c   :  { %v1815_v29 = vadd.f32 %v1814_v63, %v1708_v12  ;;  %1444 = vst [vmem:[#allocation8 + $0x150] sm:$0xff] %v800_v23  ;;  %v1550_v31 = vadd.f32 %v1549_v9, %v800_v23  ;;  %v1710_v33 = vmul.f32 %v800_v23, %v800_v23  ;;  %v802_v37 = vpop.f32.mrb[43].mxu0  ;;  %1508 = vst [vmem:[#allocation8 + $0x350] sm:$0xff] %v2445_v26  ;;  %v2448_v39 = vpop.f32.mrb[43].mxu1 }
 0x15d   :  { %v1884_v41 = vadd.f32 %v1883_v3, %v1709_v19  ;;  %1445 = vst [vmem:[#allocation8 + $0x158] sm:$0xff] %v802_v37  ;;  %v1619_v45 = vadd.f32 %v1618_v17, %v802_v37  ;;  %v1711_v47 = vmul.f32 %v802_v37, %v802_v37  ;;  %1509 = vst [vmem:[#allocation8 + $0x358] sm:$0xff] %v2448_v39 }
 0x15e   :  { %v1816_v52 = vadd.f32 %v1815_v29, %v1710_v33 }
 0x15f   :  { %v1885_v55 = vadd.f32 %v1884_v41, %v1711_v47 }
 0x161   :  { %v806_v57 = vpop.f32.mrb[44].mxu0  ;;  %v2451_v61 = vpop.f32.mrb[44].mxu1 }
 0x162   :  { %2772 = vst [vmem:[#allocation15_spill] sm:$0xff] %v2451_v61  ;;  %1446 = vst [vmem:[#allocation8 + $0x160] sm:$0xff] %v806_v57  ;;  %v1551_v63 = vadd.f32 %v1550_v31, %v806_v57  ;;  %v1712_v6 = vmul.f32 %v806_v57, %v806_v57  ;;  %v808_v9 = vpop.f32.mrb[45].mxu0  ;;  %v2454_v12 = vpop.f32.mrb[45].mxu1 }
 0x163   :  { %1510 = vst [vmem:[#allocation8 + $0x360] sm:$0xff] %v2451_v61  ;;  %2773 = vst [vmem:[#allocation16_spill] sm:$0xff] %v2454_v12  ;;  %v1620_v3 = vadd.f32 %v1619_v45, %v808_v9  ;;  %v1713_v13 = vmul.f32 %v808_v9, %v808_v9  ;;  %v810_v17 = vpop.f32.mrb[46].mxu0  ;;  %v2457_v19 = vpop.f32.mrb[46].mxu1 }
 0x164   :  { %1447 = vst [vmem:[#allocation8 + $0x168] sm:$0xff] %v808_v9  ;;  %1511 = vst [vmem:[#allocation8 + $0x368] sm:$0xff] %v2454_v12  ;;  %v1817_v23 = vadd.f32 %v1816_v52, %v1712_v6  ;;  %v1552_v29 = vadd.f32 %v1551_v63, %v810_v17  ;;  %v1714_v33 = vmul.f32 %v810_v17, %v810_v17  ;;  %v812_v37 = vpop.f32.mrb[47].mxu0  ;;  %v2460_v31 = vpop.f32.mrb[47].mxu1 }
 0x165   :  { %2774 = vst [vmem:[#allocation17_spill] sm:$0xff] %v2457_v19  ;;  %1448 = vst [vmem:[#allocation8 + $0x170] sm:$0xff] %v810_v17  ;;  %v1886_v41 = vadd.f32 %v1885_v55, %v1713_v13  ;;  %v1621_v47 = vadd.f32 %v1620_v3, %v812_v37  ;;  %v1715_v57 = vmul.f32 %v812_v37, %v812_v37 }
 0x166   :  { %1512 = vst [vmem:[#allocation8 + $0x370] sm:$0xff] %v2457_v19  ;;  %2775 = vst [vmem:[#allocation18_spill] sm:$0xff] %v2460_v31  ;;  %v1818_v45 = vadd.f32 %v1817_v23, %v1714_v33 }
 0x167   :  { %1449 = vst [vmem:[#allocation8 + $0x178] sm:$0xff] %v812_v37  ;;  %1513 = vst [vmem:[#allocation8 + $0x378] sm:$0xff] %v2460_v31  ;;  %v1887_v9 = vadd.f32 %v1886_v41, %v1715_v57 }
 0x169   :  { %v816_v12 = vpop.f32.mrb[48].mxu0  ;;  %v2463_v61 = vpop.f32.mrb[48].mxu1 }
 0x16a   :  { %2776 = vst [vmem:[#allocation19_spill] sm:$0xff] %v2463_v61  ;;  %1450 = vst [vmem:[#allocation8 + $0x180] sm:$0xff] %v816_v12  ;;  %v1553_v52 = vadd.f32 %v1552_v29, %v816_v12  ;;  %v1716_v63 = vmul.f32 %v816_v12, %v816_v12  ;;  %v818_v6 = vpop.f32.mrb[49].mxu0  ;;  %v2466_v17 = vpop.f32.mrb[49].mxu1 }
 0x16b   :  { %1514 = vst [vmem:[#allocation8 + $0x380] sm:$0xff] %v2463_v61  ;;  %2777 = vst [vmem:[#allocation20_spill] sm:$0xff] %v2466_v17  ;;  %v1622_v55 = vadd.f32 %v1621_v47, %v818_v6  ;;  %v1717_v13 = vmul.f32 %v818_v6, %v818_v6  ;;  %v820_v3 = vpop.f32.mrb[50].mxu0  ;;  %v2469_v37 = vpop.f32.mrb[50].mxu1 }
 0x16c   :  { %1451 = vst [vmem:[#allocation8 + $0x188] sm:$0xff] %v818_v6  ;;  %1515 = vst [vmem:[#allocation8 + $0x388] sm:$0xff] %v2466_v17  ;;  %v1819_v23 = vadd.f32 %v1818_v45, %v1716_v63  ;;  %v1554_v33 = vadd.f32 %v1553_v52, %v820_v3  ;;  %v1718_v41 = vmul.f32 %v820_v3, %v820_v3  ;;  %v822_v57 = vpop.f32.mrb[51].mxu0  ;;  %v2472_v12 = vpop.f32.mrb[51].mxu1 }
 0x16d   :  { %2778 = vst [vmem:[#allocation21_spill] sm:$0xff] %v2469_v37  ;;  %1452 = vst [vmem:[#allocation8 + $0x190] sm:$0xff] %v820_v3  ;;  %v1888_v29 = vadd.f32 %v1887_v9, %v1717_v13  ;;  %v1623_v61 = vadd.f32 %v1622_v55, %v822_v57  ;;  %v1719_v31 = vmul.f32 %v822_v57, %v822_v57 }
 0x16e   :  { %1516 = vst [vmem:[#allocation8 + $0x390] sm:$0xff] %v2469_v37  ;;  %2779 = vst [vmem:[#allocation22_spill] sm:$0xff] %v2472_v12  ;;  %v1820_v47 = vadd.f32 %v1819_v23, %v1718_v41 }
 0x16f   :  { %1453 = vst [vmem:[#allocation8 + $0x198] sm:$0xff] %v822_v57  ;;  %1517 = vst [vmem:[#allocation8 + $0x398] sm:$0xff] %v2472_v12  ;;  %v1889_v6 = vadd.f32 %v1888_v29, %v1719_v31 }
 0x171   :  { %v826_v17 = vpop.f32.mrb[52].mxu0  ;;  %v2475_v19 = vpop.f32.mrb[52].mxu1 }
 0x172   :  { %2780 = vst [vmem:[#allocation23_spill] sm:$0xff] %v2475_v19  ;;  %1454 = vst [vmem:[#allocation8 + $0x1a0] sm:$0xff] %v826_v17  ;;  %v1555_v45 = vadd.f32 %v1554_v33, %v826_v17  ;;  %v1720_v52 = vmul.f32 %v826_v17, %v826_v17  ;;  %v828_v63 = vpop.f32.mrb[53].mxu0  ;;  %v2478_v3 = vpop.f32.mrb[53].mxu1 }
 0x173   :  { %1518 = vst [vmem:[#allocation8 + $0x3a0] sm:$0xff] %v2475_v19  ;;  %2781 = vst [vmem:[#allocation24_spill] sm:$0xff] %v2478_v3  ;;  %v1624_v9 = vadd.f32 %v1623_v61, %v828_v63  ;;  %v1721_v13 = vmul.f32 %v828_v63, %v828_v63  ;;  %v830_v55 = vpop.f32.mrb[54].mxu0  ;;  %v2481_v57 = vpop.f32.mrb[54].mxu1 }
 0x174   :  { %1455 = vst [vmem:[#allocation8 + $0x1a8] sm:$0xff] %v828_v63  ;;  %1519 = vst [vmem:[#allocation8 + $0x3a8] sm:$0xff] %v2478_v3  ;;  %v1821_v31 = vadd.f32 %v1820_v47, %v1720_v52  ;;  %v1556_v23 = vadd.f32 %v1555_v45, %v830_v55  ;;  %v1722_v41 = vmul.f32 %v830_v55, %v830_v55  ;;  %v832_v29 = vpop.f32.mrb[55].mxu0  ;;  %v2484_v17 = vpop.f32.mrb[55].mxu1 }
 0x175   :  { %1456 = vst [vmem:[#allocation8 + $0x1b0] sm:$0xff] %v830_v55  ;;  %1520 = vst [vmem:[#allocation8 + $0x3b0] sm:$0xff] %v2481_v57  ;;  %v1890_v33 = vadd.f32 %v1889_v6, %v1721_v13  ;;  %v1625_v19 = vadd.f32 %v1624_v9, %v832_v29  ;;  %v1723_v12 = vmul.f32 %v832_v29, %v832_v29 }
 0x176   :  { %2782 = vst [vmem:[#allocation25_spill] sm:$0xff] %v2484_v17  ;;  %1457 = vst [vmem:[#allocation8 + $0x1b8] sm:$0xff] %v832_v29  ;;  %v1822_v61 = vadd.f32 %v1821_v31, %v1722_v41 }
 0x177   :  { %1521 = vst [vmem:[#allocation8 + $0x3b8] sm:$0xff] %v2484_v17  ;;  %v1891_v63 = vadd.f32 %v1890_v33, %v1723_v12 }
 0x179   :  { %v836_v3 = vpop.f32.mrb[56].mxu0  ;;  %v2487_v37 = vpop.f32.mrb[56].mxu1 }
 0x17a   :  { %2783 = vst [vmem:[#allocation26_spill] sm:$0xff] %v2487_v37  ;;  %1458 = vst [vmem:[#allocation8 + $0x1c0] sm:$0xff] %v836_v3  ;;  %v1557_v47 = vadd.f32 %v1556_v23, %v836_v3  ;;  %v1724_v45 = vmul.f32 %v836_v3, %v836_v3  ;;  %v838_v52 = vpop.f32.mrb[57].mxu0  ;;  %v2490_v55 = vpop.f32.mrb[57].mxu1 }
 0x17b   :  { %1522 = vst [vmem:[#allocation8 + $0x3c0] sm:$0xff] %v2487_v37  ;;  %2784 = vst [vmem:[#allocation27_spill] sm:$0xff] %v2490_v55  ;;  %v1626_v6 = vadd.f32 %v1625_v19, %v838_v52  ;;  %v1725_v13 = vmul.f32 %v838_v52, %v838_v52  ;;  %v840_v9 = vpop.f32.mrb[58].mxu0  ;;  %v2493_v29 = vpop.f32.mrb[58].mxu1 }
 0x17c   :  { %1459 = vst [vmem:[#allocation8 + $0x1c8] sm:$0xff] %v838_v52  ;;  %1523 = vst [vmem:[#allocation8 + $0x3c8] sm:$0xff] %v2490_v55  ;;  %v1823_v12 = vadd.f32 %v1822_v61, %v1724_v45  ;;  %v1558_v31 = vadd.f32 %v1557_v47, %v840_v9  ;;  %v1726_v41 = vmul.f32 %v840_v9, %v840_v9  ;;  %v842_v33 = vpop.f32.mrb[59].mxu0  ;;  %v2496_v3 = vpop.f32.mrb[59].mxu1 }
 0x17d   :  { %2785 = vst [vmem:[#allocation28_spill] sm:$0xff] %v2493_v29  ;;  %1460 = vst [vmem:[#allocation8 + $0x1d0] sm:$0xff] %v840_v9  ;;  %v1892_v23 = vadd.f32 %v1891_v63, %v1725_v13  ;;  %v1627_v37 = vadd.f32 %v1626_v6, %v842_v33  ;;  %v1727_v17 = vmul.f32 %v842_v33, %v842_v33 }
 0x17e   :  { %1524 = vst [vmem:[#allocation8 + $0x3d0] sm:$0xff] %v2493_v29  ;;  %1461 = vst [vmem:[#allocation8 + $0x1d8] sm:$0xff] %v842_v33  ;;  %v1824_v19 = vadd.f32 %v1823_v12, %v1726_v41 }
 0x17f   :  { %1525 = vst [vmem:[#allocation8 + $0x3d8] sm:$0xff] %v2496_v3  ;;  %v1893_v52 = vadd.f32 %v1892_v23, %v1727_v17 }
 0x181   :  { %v846_v55 = vpop.f32.mrb[60].mxu0  ;;  %v2499_v61 = vpop.f32.mrb[60].mxu1 }
 0x182   :  { %1462 = vst [vmem:[#allocation8 + $0x1e0] sm:$0xff] %v846_v55  ;;  %v1559_v47 = vadd.f32 %v1558_v31, %v846_v55  ;;  %v1728_v45 = vmul.f32 %v846_v55, %v846_v55  ;;  %v848_v9 = vpop.f32.mrb[61].mxu0  ;;  %1526 = vst [vmem:[#allocation8 + $0x3e0] sm:$0xff] %v2499_v61  ;;  %v2502_v29 = vpop.f32.mrb[61].mxu1 }
 0x183   :  { %2786 = vst [vmem:[#allocation29_spill] sm:$0xff] %v2502_v29  ;;  %1463 = vst [vmem:[#allocation8 + $0x1e8] sm:$0xff] %v848_v9  ;;  %v1628_v63 = vadd.f32 %v1627_v37, %v848_v9  ;;  %v1729_v6 = vmul.f32 %v848_v9, %v848_v9  ;;  %v850_v13 = vpop.f32.mrb[62].mxu0  ;;  %v2505_v17 = vpop.f32.mrb[62].mxu1 }
 0x184   :  { %1527 = vst [vmem:[#allocation8 + $0x3e8] sm:$0xff] %v2502_v29  ;;  %2787 = vst [vmem:[#allocation30_spill] sm:$0xff] %v2505_v17  ;;  %v1825_v12 = vadd.f32 %v1824_v19, %v1728_v45  ;;  %v1560_v55 = vadd.f32 %v1559_v47, %v850_v13  ;;  %v1730_v31 = vmul.f32 %v850_v13, %v850_v13  ;;  %v852_v41 = vpop.f32.mrb[63].mxu0  ;;  %v2510_v33 = vpop.f32.mrb[63].mxu1 }
 0x185   :  { %1464 = vst [vmem:[#allocation8 + $0x1f0] sm:$0xff] %v850_v13  ;;  %1528 = vst [vmem:[#allocation8 + $0x3f0] sm:$0xff] %v2505_v17  ;;  %v1894_v37 = vadd.f32 %v1893_v52, %v1729_v6  ;;  %v1629_v23 = vadd.f32 %v1628_v63, %v852_v41  ;;  %v1731_v9 = vmul.f32 %v852_v41, %v852_v41 }
 0x186   :  { %2788 = vst [vmem:[#allocation31_spill] sm:$0xff] %v2510_v33  ;;  %1465 = vst [vmem:[#allocation8 + $0x1f8] sm:$0xff] %v852_v41  ;;  %v1732_v29 = vmul.f32 %v2319_v42, %v2319_v42  ;;  %v1561_v19 = vadd.f32 %v1560_v55, %v2319_v42  ;;  %v1826_v45 = vadd.f32 %v1825_v12, %v1730_v31 }
 0x187   :  { %1529 = vst [vmem:[#allocation8 + $0x3f8] sm:$0xff] %v2510_v33 }
 0x188   :  { %2159 = shalt.err (!%p2156_p6)
}
 0x189   :  { %s2160_s16 = scalar_lea.hbm %s2736_s2, 16384 }
 0x18a   :  { %p2161_p7 = scmp.ne.s32.totalorder %s2736_s2, %s2160_s16  ;;  %p2164_p8 = scmp.lt.u32.totalorder %s2160_s16, %s2736_s2 }
 0x18c   :  { %p2166_p9 = pnand %p2164_p8, %p2161_p7 }
 0x18e   :  { %2169 = shalt.err (!%p2166_p9)
}
 0x18f   :  { %s2208_s21 = smov 256   ;;  %s2209_s22 = smov 16   ;;  %v1733_v42 = vmul.f32 %v2322_v44, %v2322_v44  ;;  %v1630_v52 = vadd.f32 %v1629_v23, %v2322_v44  ;;  %v1895_v47 = vadd.f32 %v1894_v37, %v1731_v9  ;;  %v1734_v63 = vmul.f32 %v2325_v46, %v2325_v46 }
 0x190   :  { %1955 = dma.vmem_to_hbm [thread:$0]  %s2507_s12, 16384, %s2736_s2, [#allocation5], %s2208_s21, %s2208_s21, %s2209_s22   ;;  %v1562_v6 = vadd.f32 %v1561_v19, %v2325_v46  ;;  %v1827_v13 = vadd.f32 %v1826_v45, %v1732_v29  ;;  %v1735_v12 = vmul.f32 %v2328_v51, %v2328_v51  ;;  %v1736_v41 = vmul.f32 %v2331_v58, %v2331_v58 }
 0x191   :  { %v1631_v55 = vadd.f32 %v1630_v52, %v2328_v51  ;;  %v1896_v31 = vadd.f32 %v1895_v47, %v1733_v42  ;;  %v1737_v44 = vmul.f32 %v2334_v62, %v2334_v62  ;;  %v1738_v46 = vmul.f32 %v2337_v2, %v2337_v2  ;;  %s2210_s2 = smov [#allocation9]  }
 0x192   :  { %v1563_v33 = vadd.f32 %v1562_v6, %v2331_v58  ;;  %v1828_v17 = vadd.f32 %v1827_v13, %v1734_v63  ;;  %v1739_v51 = vmul.f32 %v2340_v7, %v2340_v7  ;;  %v1740_v58 = vmul.f32 %v2343_v14, %v2343_v14  ;;  %s1962_s25 = sshll.u32 %s2210_s2, 4  ;;  %s1963_s25 = int_to_ptr.vmem [resolvable:$true] %s1962_s25 }
 0x193   :  { %v1632_v37 = vadd.f32 %v1631_v55, %v2334_v62  ;;  %v1897_v23 = vadd.f32 %v1896_v31, %v1735_v12  ;;  %v1741_v62 = vmul.f32 %v2346_v18, %v2346_v18  ;;  %s2170_s26 = scalar_lea.vmem %s1963_s25, 256  ;;  %p2175_p11 = scmp.lt.s32.totalorder %s1963_s25, %s1963_s25 }
 0x194   :  { %v1564_v29 = vadd.f32 %v1563_v33, %v2337_v2  ;;  %v1829_v9 = vadd.f32 %v1828_v17, %v1736_v41  ;;  %v1742_v2 = vmul.f32 %v2349_v22, %v2349_v22  ;;  %p2171_p10 = scmp.ne.s32.totalorder %s1963_s25, %s2170_s26  ;;  %p2176_p12 = scmp.lt.s32.totalorder %s2170_s26, %s2170_s26 }
 0x195   :  { %v1633_v19 = vadd.f32 %v1632_v37, %v2340_v7  ;;  %v1898_v45 = vadd.f32 %v1897_v23, %v1737_v44  ;;  %v1743_v7 = vmul.f32 %v2352_v27, %v2352_v27 }
 0x196   :  { %v1565_v42 = vadd.f32 %v1564_v29, %v2343_v14  ;;  %v1830_v52 = vadd.f32 %v1829_v9, %v1738_v46  ;;  %v1744_v14 = vmul.f32 %v2355_v34, %v2355_v34  ;;  %p2177_p13 = por %p2176_p12, %p2175_p11 }
 0x197   :  { %v1634_v47 = vadd.f32 %v1633_v19, %v2346_v18  ;;  %v1899_v63 = vadd.f32 %v1898_v45, %v1739_v51  ;;  %v1745_v18 = vmul.f32 %v2358_v38, %v2358_v38 }
 0x198   :  { %v1566_v17 = vadd.f32 %v1565_v42, %v2349_v22  ;;  %v1831_v33 = vadd.f32 %v1830_v52, %v1740_v58  ;;  %v1746_v22 = vmul.f32 %v2361_v43, %v2361_v43  ;;  %p2178_p0 = pnand %p2177_p13, %p2171_p10 }
 0x199   :  { %v1635_v6 = vadd.f32 %v1634_v47, %v2352_v27  ;;  %v1900_v13 = vadd.f32 %v1899_v63, %v1741_v62  ;;  %v1747_v27 = vmul.f32 %v2364_v50, %v2364_v50 }
 0x19a   :  { %v1567_v12 = vadd.f32 %v1566_v17, %v2355_v34  ;;  %v1832_v55 = vadd.f32 %v1831_v33, %v1742_v2  ;;  %v1748_v34 = vmul.f32 %v2367_v59, %v2367_v59 }
 0x19b   :  { %v1636_v31 = vadd.f32 %v1635_v6, %v2358_v38  ;;  %v1901_v41 = vadd.f32 %v1900_v13, %v1743_v7  ;;  %v1749_v38 = vmul.f32 %v2370_v0, %v2370_v0 }
 0x19c   :  { %v1568_v44 = vadd.f32 %v1567_v12, %v2361_v43  ;;  %v1833_v37 = vadd.f32 %v1832_v55, %v1744_v14  ;;  %v1750_v43 = vmul.f32 %v2373_v5, %v2373_v5 }
 0x19d   :  { %v1637_v23 = vadd.f32 %v1636_v31, %v2364_v50  ;;  %v1902_v46 = vadd.f32 %v1901_v41, %v1745_v18  ;;  %v1751_v50 = vmul.f32 %v2376_v11, %v2376_v11 }
 0x19e   :  { %v1834_v29 = vadd.f32 %v1833_v37, %v1746_v22  ;;  %v1569_v9 = vadd.f32 %v1568_v44, %v2367_v59  ;;  %v1752_v59 = vmul.f32 %v2379_v20, %v2379_v20 }
 0x19f   :  { %v1903_v51 = vadd.f32 %v1902_v46, %v1747_v27  ;;  %v1638_v19 = vadd.f32 %v1637_v23, %v2370_v0  ;;  %v1753_v0 = vmul.f32 %v2382_v25, %v2382_v25 }
 0x1a0   :  { %v1570_v45 = vadd.f32 %v1569_v9, %v2373_v5  ;;  %v1835_v58 = vadd.f32 %v1834_v29, %v1748_v34  ;;  %v1754_v5 = vmul.f32 %v2385_v30, %v2385_v30 }
 0x1a1   :  { %v1639_v42 = vadd.f32 %v1638_v19, %v2376_v11  ;;  %v1904_v52 = vadd.f32 %v1903_v51, %v1749_v38  ;;  %v1755_v11 = vmul.f32 %v2388_v36, %v2388_v36  ;;  %v1764_v38 = vmul.f32 %v2415_v49, %v2415_v49 }
 0x1a2   :  { %v1571_v62 = vadd.f32 %v1570_v45, %v2379_v20  ;;  %v1836_v47 = vadd.f32 %v1835_v58, %v1750_v43  ;;  %v1756_v20 = vmul.f32 %v2391_v48, %v2391_v48  ;;  %v1765_v19 = vmul.f32 %v2418_v56, %v2418_v56 }
 0x1a3   :  { %v1640_v63 = vadd.f32 %v1639_v42, %v2382_v25  ;;  %v1905_v2 = vadd.f32 %v1904_v52, %v1751_v50  ;;  %v1757_v25 = vmul.f32 %v2394_v54, %v2394_v54  ;;  %v1766_v58 = vmul.f32 %v2421_v1, %v2421_v1 }
 0x1a4   :  { %v1572_v17 = vadd.f32 %v1571_v62, %v2385_v30  ;;  %v1837_v33 = vadd.f32 %v1836_v47, %v1752_v59  ;;  %v1758_v30 = vmul.f32 %v2397_v60, %v2397_v60  ;;  %v1767_v42 = vmul.f32 %v2424_v10, %v2424_v10 }
 0x1a5   :  { %v1641_v7 = vadd.f32 %v1640_v63, %v2388_v36  ;;  %v1906_v6 = vadd.f32 %v1905_v2, %v1753_v0  ;;  %v1759_v36 = vmul.f32 %v2400_v4, %v2400_v4  ;;  %v1768_v59 = vmul.f32 %v2427_v24, %v2427_v24 }
 0x1a6   :  { %v1573_v13 = vadd.f32 %v1572_v17, %v2391_v48  ;;  %v1838_v14 = vadd.f32 %v1837_v33, %v1754_v5  ;;  %v1760_v48 = vmul.f32 %v2403_v15, %v2403_v15  ;;  %v1769_v47 = vmul.f32 %v2430_v32, %v2430_v32 }
 0x1a7   :  { %v1642_v12 = vadd.f32 %v1641_v7, %v2394_v54  ;;  %v1907_v55 = vadd.f32 %v1906_v6, %v1755_v11  ;;  %v1761_v54 = vmul.f32 %v2406_v21, %v2406_v21  ;;  %v1770_v63 = vmul.f32 %v2433_v40, %v2433_v40 }
 0x1a8   :  { %v1574_v18 = vadd.f32 %v1573_v13, %v2397_v60  ;;  %v1839_v31 = vadd.f32 %v1838_v14, %v1756_v20  ;;  %v1762_v60 = vmul.f32 %v2409_v28, %v2409_v28  ;;  %v1771_v5 = vmul.f32 %v2436_v53, %v2436_v53 }
 0x1a9   :  { %v1643_v41 = vadd.f32 %v1642_v12, %v2400_v4  ;;  %v1908_v22 = vadd.f32 %v1907_v55, %v1757_v25  ;;  %v1763_v4 = vmul.f32 %v2412_v35, %v2412_v35  ;;  %v1772_v33 = vmul.f32 %v2439_v8, %v2439_v8 }
 0x1aa   :  { %v1575_v44 = vadd.f32 %v1574_v18, %v2403_v15  ;;  %v1840_v37 = vadd.f32 %v1839_v31, %v1758_v30  ;;  %v1773_v7 = vmul.f32 %v2442_v16, %v2442_v16  ;;  %v1774_v20 = vmul.f32 %v2445_v26, %v2445_v26 }
 0x1ab   :  { %v1644_v27 = vadd.f32 %v1643_v41, %v2406_v21  ;;  %v1909_v23 = vadd.f32 %v1908_v22, %v1759_v36  ;;  %v1775_v14 = vmul.f32 %v2448_v39, %v2448_v39 }
 0x1ac   :  { %v1576_v46 = vadd.f32 %v1575_v44, %v2409_v28  ;;  %v1841_v34 = vadd.f32 %v1840_v37, %v1760_v48 }
 0x1ad   :  { %v1645_v29 = vadd.f32 %v1644_v27, %v2412_v35  ;;  %v1910_v9 = vadd.f32 %v1909_v23, %v1761_v54  ;;  %v2793_v27 = vld [vmem:[#allocation19_spill] sm:$0xff] }
 0x1ae   :  { %v1577_v15 = vadd.f32 %v1576_v46, %v2415_v49  ;;  %v1842_v51 = vadd.f32 %v1841_v34, %v1762_v60  ;;  %v1780_v60 = vmul.f32 %v2793_v27, %v2793_v27  ;;  %v2794_v34 = vld [vmem:[#allocation20_spill] sm:$0xff] }
 0x1af   :  { %v1646_v21 = vadd.f32 %v1645_v29, %v2418_v56  ;;  %v1911_v43 = vadd.f32 %v1910_v9, %v1763_v4  ;;  %v1781_v29 = vmul.f32 %v2794_v34, %v2794_v34 }
 0x1b0   :  { %v1843_v28 = vadd.f32 %v1842_v51, %v1764_v38  ;;  %v1578_v45 = vadd.f32 %v1577_v15, %v2421_v1  ;;  %v2795_v15 = vld [vmem:[#allocation21_spill] sm:$0xff] }
 0x1b1   :  { %v1912_v35 = vadd.f32 %v1911_v43, %v1765_v19  ;;  %v1647_v50 = vadd.f32 %v1646_v21, %v2424_v10  ;;  %v1782_v51 = vmul.f32 %v2795_v15, %v2795_v15  ;;  %v2796_v19 = vld [vmem:[#allocation22_spill] sm:$0xff] }
 0x1b2   :  { %v1844_v49 = vadd.f32 %v1843_v28, %v1766_v58  ;;  %v1579_v52 = vadd.f32 %v1578_v45, %v2427_v24  ;;  %v1783_v28 = vmul.f32 %v2796_v19, %v2796_v19  ;;  %v2797_v58 = vld [vmem:[#allocation23_spill] sm:$0xff] }
 0x1b3   :  { %v1913_v56 = vadd.f32 %v1912_v35, %v1767_v42  ;;  %v1648_v62 = vadd.f32 %v1647_v50, %v2430_v32  ;;  %v1784_v50 = vmul.f32 %v2797_v58, %v2797_v58 }
 0x1b4   :  { %v1845_v0 = vadd.f32 %v1844_v49, %v1768_v59  ;;  %v1580_v1 = vadd.f32 %v1579_v52, %v2433_v40  ;;  %v2798_v49 = vld [vmem:[#allocation24_spill] sm:$0xff] }
 0x1b5   :  { %v1914_v2 = vadd.f32 %v1913_v56, %v1769_v47  ;;  %v1649_v10 = vadd.f32 %v1648_v62, %v2436_v53  ;;  %v1785_v59 = vmul.f32 %v2798_v49, %v2798_v49  ;;  %v1786_v47 = vmul.f32 %v2481_v57, %v2481_v57 }
 0x1b6   :  { %v1846_v17 = vadd.f32 %v1845_v0, %v1770_v63  ;;  %v1581_v24 = vadd.f32 %v1580_v1, %v2439_v8  ;;  %v2789_v8 = vld [vmem:[#allocation15_spill] sm:$0xff]  ;;  %v2799_v1 = vld [vmem:[#allocation25_spill] sm:$0xff] }
 0x1b7   :  { %v1915_v11 = vadd.f32 %v1914_v2, %v1771_v5  ;;  %v1650_v32 = vadd.f32 %v1649_v10, %v2442_v16  ;;  %v1776_v55 = vmul.f32 %v2789_v8, %v2789_v8  ;;  %v2790_v16 = vld [vmem:[#allocation16_spill] sm:$0xff]  ;;  %v1787_v2 = vmul.f32 %v2799_v1, %v2799_v1  ;;  %v2800_v5 = vld [vmem:[#allocation26_spill] sm:$0xff] }
 0x1b8   :  { %v1847_v6 = vadd.f32 %v1846_v17, %v1772_v33  ;;  %v1582_v40 = vadd.f32 %v1581_v24, %v2445_v26  ;;  %v1777_v31 = vmul.f32 %v2790_v16, %v2790_v16  ;;  %v2791_v26 = vld [vmem:[#allocation17_spill] sm:$0xff]  ;;  %v1788_v24 = vmul.f32 %v2800_v5, %v2800_v5 }
 0x1b9   :  { %v1916_v13 = vadd.f32 %v1915_v11, %v1773_v7  ;;  %v1651_v53 = vadd.f32 %v1650_v32, %v2448_v39  ;;  %v1778_v22 = vmul.f32 %v2791_v26, %v2791_v26  ;;  %v2792_v39 = vld [vmem:[#allocation18_spill] sm:$0xff]  ;;  %v2801_v11 = vld [vmem:[#allocation27_spill] sm:$0xff] }
 0x1ba   :  { %v1848_v25 = vadd.f32 %v1847_v6, %v1774_v20  ;;  %v1583_v12 = vadd.f32 %v1582_v40, %v2789_v8  ;;  %v1779_v37 = vmul.f32 %v2792_v39, %v2792_v39  ;;  %v1789_v7 = vmul.f32 %v2801_v11, %v2801_v11  ;;  %v2803_v8 = vld [vmem:[#allocation29_spill] sm:$0xff] }
 0x1bb   :  { %v1917_v30 = vadd.f32 %v1916_v13, %v1775_v14  ;;  %v1652_v18 = vadd.f32 %v1651_v53, %v2790_v16  ;;  %v1792_v13 = vmul.f32 %v2499_v61, %v2499_v61 }
 0x1bc   :  { %v1849_v36 = vadd.f32 %v1848_v25, %v1776_v55  ;;  %v1584_v41 = vadd.f32 %v1583_v12, %v2791_v26  ;;  %v1791_v25 = vmul.f32 %v2496_v3, %v2496_v3  ;;  %v1793_v12 = vmul.f32 %v2803_v8, %v2803_v8 }
 0x1bd   :  { %v1918_v48 = vadd.f32 %v1917_v30, %v1777_v31  ;;  %v1653_v44 = vadd.f32 %v1652_v18, %v2792_v39 }
 0x1be   :  { %v1850_v54 = vadd.f32 %v1849_v36, %v1778_v22  ;;  %v1585_v23 = vadd.f32 %v1584_v41, %v2793_v27  ;;  %v2804_v36 = vld [vmem:[#allocation30_spill] sm:$0xff] }
 0x1bf   :  { %v1919_v46 = vadd.f32 %v1918_v48, %v1779_v37  ;;  %v1654_v4 = vadd.f32 %v1653_v44, %v2794_v34  ;;  %v1794_v41 = vmul.f32 %v2804_v36, %v2804_v36  ;;  %v2805_v48 = vld [vmem:[#allocation31_spill] sm:$0xff]  ;;  %v1934_v34 = vlaneseq }
 0x1c0   :  { %v1851_v9 = vadd.f32 %v1850_v54, %v1780_v60  ;;  %v1586_v38 = vadd.f32 %v1585_v23, %v2795_v15 }
 0x1c1   :  { %v1920_v21 = vadd.f32 %v1919_v46, %v1781_v29  ;;  %v1655_v43 = vadd.f32 %v1654_v4, %v2796_v19 }
 0x1c2   :  { %v1852_v45 = vadd.f32 %v1851_v9, %v1782_v51  ;;  %v1587_v35 = vadd.f32 %v1586_v38, %v2797_v58 }
 0x1c3   :  { %v1921_v42 = vadd.f32 %v1920_v21, %v1783_v28  ;;  %v1656_v52 = vadd.f32 %v1655_v43, %v2798_v49  ;;  %v1935_v43 = vshrl.u32 %v1934_v34, 7 }
 0x1c4   :  { %v1853_v56 = vadd.f32 %v1852_v45, %v1784_v50  ;;  %v1588_v62 = vadd.f32 %v1587_v35, %v2481_v57  ;;  %v2802_v57 = vld [vmem:[#allocation28_spill] sm:$0xff] }
 0x1c5   :  { %v1922_v0 = vadd.f32 %v1921_v42, %v1785_v59  ;;  %v1657_v63 = vadd.f32 %v1656_v52, %v2799_v1  ;;  %v1790_v20 = vmul.f32 %v2802_v57, %v2802_v57  ;;  %vm1937_vm2 = vcmp.eq.s32.totalorder %v1935_v43, 1 }
 0x1c6   :  { %v1854_v10 = vadd.f32 %v1853_v56, %v1786_v47  ;;  %v1589_v17 = vadd.f32 %v1588_v62, %v2800_v5  ;;  %vm1936_vm3 = vcmp.eq.s32.totalorder %v1935_v43, 0 }
 0x1c7   :  { %v1923_v33 = vadd.f32 %v1922_v0, %v1787_v2  ;;  %v1658_v32 = vadd.f32 %v1657_v63, %v2801_v11 }
 0x1c8   :  { %v1855_v6 = vadd.f32 %v1854_v10, %v1788_v24  ;;  %v1590_v40 = vadd.f32 %v1589_v17, %v2802_v57 }
 0x1c9   :  { %v1924_v53 = vadd.f32 %v1923_v33, %v1789_v7  ;;  %v1659_v14 = vadd.f32 %v1658_v32, %v2496_v3  ;;  %v1795_v3 = vmul.f32 %v2805_v48, %v2805_v48 }
 0x1ca   :  { %v1856_v55 = vadd.f32 %v1855_v6, %v1790_v20  ;;  %v1591_v30 = vadd.f32 %v1590_v40, %v2499_v61 }
 0x1cb   :  { %v1925_v16 = vadd.f32 %v1924_v53, %v1791_v25  ;;  %v1660_v18 = vadd.f32 %v1659_v14, %v2803_v8 }
 0x1cc   :  { %v1857_v31 = vadd.f32 %v1856_v55, %v1792_v13  ;;  %v1592_v26 = vadd.f32 %v1591_v30, %v2804_v36 }
 0x1cd   :  { %v1926_v22 = vadd.f32 %v1925_v16, %v1793_v12  ;;  %v1661_v39 = vadd.f32 %v1660_v18, %v2805_v48 }
 0x1ce   :  { %v1593_v44 = vrot.slane %v1592_v26, 4  ;;  %v1858_v37 = vadd.f32 %v1857_v31, %v1794_v41 }
 0x1cf   :  { %v1662_v54 = vrot.slane %v1661_v39, 4  ;;  %v1927_v27 = vadd.f32 %v1926_v22, %v1795_v3 }
 0x1d0   :  { %v1594_v61 = vadd.f32 %v1593_v44, %v1592_v26  ;;  %v1859_v23 = vrot.slane %v1858_v37, 4 }
 0x1d1   :  { %v1663_v60 = vadd.f32 %v1662_v54, %v1661_v39  ;;  %v1928_v46 = vrot.slane %v1927_v27, 4 }
 0x1d2   :  { %v1595_v4 = vrot.slane %v1594_v61, 2  ;;  %v1860_v29 = vadd.f32 %v1859_v23, %v1858_v37 }
 0x1d3   :  { %v1664_v9 = vrot.slane %v1663_v60, 2  ;;  %v1929_v15 = vadd.f32 %v1928_v46, %v1927_v27 }
 0x1d4   :  { %v1596_v38 = vadd.f32 %v1595_v4, %v1594_v61  ;;  %v1861_v51 = vrot.slane %v1860_v29, 2 }
 0x1d5   :  { %v1665_v21 = vadd.f32 %v1664_v9, %v1663_v60  ;;  %v1930_v19 = vrot.slane %v1929_v15, 2 }
 0x1d6   :  { %v1862_v28 = vadd.f32 %v1861_v51, %v1860_v29  ;;  %v1597_v45 = vrot.slane %v1596_v38, 1 }
 0x1d7   :  { %v1931_v58 = vadd.f32 %v1930_v19, %v1929_v15  ;;  %v1666_v35 = vrot.slane %v1665_v21, 1 }
 0x1d8   :  { %v1863_v50 = vrot.slane %v1862_v28, 1  ;;  %v1598_v52 = vadd.f32 %v1597_v45, %v1596_v38 }
 0x1d9   :  { %v1932_v42 = vrot.slane %v1931_v58, 1  ;;  %v1667_v56 = vadd.f32 %v1666_v35, %v1665_v21 }
 0x1da   :  { %v1864_v49 = vadd.f32 %v1863_v50, %v1862_v28 }
 0x1db   :  { %v1933_v59 = vadd.f32 %v1932_v42, %v1931_v58 }
 0x1dc   :  { %v1938_v62 = vsel %vm1937_vm2, %v1864_v49, 0.0 }
 0x1dd   :  { %v1939_v47 = vsel %vm1937_vm2, %v1933_v59, 0.0  ;;  %v1940_v0 = vsel %vm1936_vm3, %v1598_v52, %v1938_v62 }
 0x1de   :  { %v1941_v1 = vsel %vm1936_vm3, %v1667_v56, %v1939_v47  ;;  %1942 = vst [vmem:[#allocation9] sm:$0xff] %v1940_v0 }
 0x1df   :  { %1943 = vst [vmem:[#allocation9 + $0x8] sm:$0xff] %v1941_v1 }
 0x1e0   :  { %2181 = shalt.err (!%p2178_p0)
}
 0x1e1   :  { %s2182_s29 = scalar_lea.hbm %s2737_s3, 256 }
 0x1e2   :  { %p2183_p1 = scmp.ne.s32.totalorder %s2737_s3, %s2182_s29  ;;  %p2186_p2 = scmp.lt.u32.totalorder %s2182_s29, %s2737_s3 }
 0x1e4   :  { %p2188_p3 = pnand %p2186_p2, %p2183_p1 }
 0x1e6   :  { %2191 = shalt.err (!%p2188_p3)
}
 0x1e7   :  { %1965 = dma.vmem_to_hbm [thread:$0]  %s1963_s25, 256, %s2737_s3, [#allocation10]  }
 0x1e8   :  { %2196 = dma.done.wait [#allocation5], 16384  }
 0x1e9   :  { %2197 = vsyncadd [#allocation5], 4294950912 }
 0x1ea   :  { %2198 = dma.done.wait [#allocation10], 256  }
 0x1eb   :  { %2199 = vsyncadd [#allocation10], 4294967040 }
 0x1ec   :  { %1972 = vsyncpa [#allocation4], 1 }
 0x1ed   :  { %1973 = vsyncpa [#allocation7], 1 }
 0x1ee   :  { %1974 = vsyncpa [#allocation5], 1 }
 0x1ef   :  { %1975 = vsyncpa [#allocation10], 1 }

</bundles_post_ra>
